<compile_context>
chip_gen: v7x
topology: tpu7x:2x2x1
jax: 0.10.0
libtpu: 0.0.40
codegen_flags: <defaults>
</compile_context>

<pallas_src>
import functools

import jax
import jax.numpy as jnp
from jax import lax
from jax.experimental import pallas as pl
from jax.experimental.pallas import tpu as pltpu

LANE = 128
VMEM = pl.BlockSpec(memory_space=pltpu.MemorySpace.VMEM)


def _round_up(n, m=LANE):
    return ((n + m - 1) // m) * m


# ---------------- fused kernel: conv backbone + pool + projector + SimCLR loss ---------------
def _fused_simclr_kernel(patches_ref, wc_ref, bc_ref, w1_ref, b1_ref, w2_ref, b2_ref,
                         loss_ref, *, batch, hw, inv_temperature):
    B = batch
    n = 2 * B                      # both views stacked: rows 0..B-1 = view1, B..2B-1 = view2
    rows = n * hw                  # 2*B*H*W im2col rows

    # ---- backbone: 3x3 conv as a single lane-dense (rows,128)@(128,F_pad) matmul + ReLU ----
    h = jnp.dot(patches_ref[...], wc_ref[...], preferred_element_type=jnp.float32)
    h = jnp.maximum(h + bc_ref[...], 0.0)                               # (rows, F_pad) f32

    # ---- global average pool on the MXU: (2B, rows) @ (rows, F_pad) -> (2B, F_pad) ----
    # Block-constant pooling matrix in bf16 (1/HW exact in bf16 for power-of-two HW).
    s_idx = lax.broadcasted_iota(jnp.int32, (n, rows), 0)
    p_idx = lax.broadcasted_iota(jnp.int32, (n, rows), 1)
    in_sample = (p_idx >= s_idx * hw) & (p_idx < (s_idx + 1) * hw)
    pool = jnp.where(in_sample, 1.0 / hw, 0.0).astype(jnp.bfloat16)
    feat = jnp.dot(pool, h.astype(jnp.bfloat16), preferred_element_type=jnp.float32)

    # ---- projector MLP (Linear -> ReLU -> Linear), both views in one chain ----
    h1 = jnp.dot(feat.astype(jnp.bfloat16), w1_ref[...],
                 preferred_element_type=jnp.float32) + b1_ref[...]
    h1 = jnp.maximum(h1, 0.0)
    z = jnp.dot(h1.astype(jnp.bfloat16), w2_ref[...],
                preferred_element_type=jnp.float32) + b2_ref[...]       # (2B, D_pad) f32

    # ---- SimCLR loss (all f32; padded projection columns are exactly 0 -> transparent) ----
    ssq = jnp.sum(z * z, axis=1, keepdims=True)
    inv_norm = lax.rsqrt(ssq + 1e-12)                   # eps guards an all-zero row
    zn = z * inv_norm
    logits = lax.dot_general(zn, zn, (((1,), (1,)), ((), ())),
                             preferred_element_type=jnp.float32) * jnp.float32(inv_temperature)
    row = lax.broadcasted_iota(jnp.int32, (n, n), 0)
    col = lax.broadcasted_iota(jnp.int32, (n, n), 1)
    PSEUDO_INF = 1.0e9
    logits = jnp.where(row == col, -PSEUDO_INF, logits)                 # mask self-pairs
    tgt_mask = col == ((row + B) % n)                                   # target(i) = (i+B) mod 2B
    tgt_logit = jnp.sum(jnp.where(tgt_mask, logits, 0.0), axis=1, keepdims=True)
    m = jnp.max(logits, axis=1, keepdims=True)
    lse = m + jnp.log(jnp.sum(jnp.exp(logits - m), axis=1, keepdims=True))
    loss = jnp.mean(lse - tgt_logit, keepdims=True)                     # (1, 1) CE mean
    # Lane-dense, unmasked store of the scalar; wrapper reads [0, 0].
    loss_ref[...] = jnp.broadcast_to(loss, loss_ref.shape)


# ---------------- parameter prep (pad once at setup, pre-cast matmul weights to bf16) --------
def prepare_params(w_conv, b_conv, w1, b1, w2, b2):
    """conv weight (3,3,C_in,F) -> flat (9*C_in padded to 128, F padded to 128); all other
    feature dims zero-padded to multiples of 128 so every matmul/store is lane-dense."""
    c_in, feat = w_conv.shape[2], w_conv.shape[3]
    hid, out = w2.shape[0], w2.shape[1]
    k, kp = 9 * c_in, _round_up(9 * c_in)
    fp, hp, op = _round_up(feat), _round_up(hid), _round_up(out)
    wc = jnp.pad(w_conv.reshape(k, feat), ((0, kp - k), (0, fp - feat)))
    return {
        "wc": wc.astype(jnp.bfloat16),
        "bc": jnp.pad(b_conv, (0, fp - feat)).reshape(1, fp).astype(jnp.float32),
        "w1": jnp.pad(w1, ((0, fp - feat), (0, hp - hid))).astype(jnp.bfloat16),
        "b1": jnp.pad(b1, (0, hp - hid)).reshape(1, hp).astype(jnp.float32),
        "w2": jnp.pad(w2, ((0, hp - hid), (0, op - out))).astype(jnp.bfloat16),
        "b2": jnp.pad(b2, (0, op - out)).reshape(1, op).astype(jnp.float32),
    }


def _im2col(x_nchw):
    """NCHW -> (B*H*W, 9*C) patch matrix for a 3x3 stride-1 SAME conv.
    Tap order (di, dj, c) matches w_conv.reshape(9*C_in, F) row-major flattening."""
    B, C, H, W = x_nchw.shape
    x = jnp.transpose(x_nchw, (0, 2, 3, 1))                              # NHWC
    xp = jnp.pad(x, ((0, 0), (1, 1), (1, 1), (0, 0)))
    taps = [xp[:, di:di + H, dj:dj + W, :] for di in range(3) for dj in range(3)]
    return jnp.concatenate(taps, axis=-1).reshape(B * H * W, 9 * C)


# ---------------- wrapper ---------------------------------------------------------------------
def simclr_forward(X1, X2, params, temperature=0.1):
    # TODO(synk): torch.distributed gather of z1/z2 and SyncBatchNorm conversion are
    # single-device no-ops here (backbone has no BN).
    B, _, H, W = X1.shape
    HW = H * W
    kp = params["wc"].shape[0]
    fp, hp, op = params["bc"].shape[1], params["b1"].shape[1], params["b2"].shape[1]
    n, rows = 2 * B, 2 * B * HW

    # Wrapper-side im2col for BOTH views stacked -> one lane-dense (2*B*HW, 128) bf16 slab
    # (layout plumbing in the wrapper is free relative to the kernel).
    patches = jnp.concatenate([_im2col(X1), _im2col(X2)], axis=0)
    patches = jnp.pad(patches, ((0, 0), (0, kp - patches.shape[1]))).astype(jnp.bfloat16)

    kernel = functools.partial(_fused_simclr_kernel, batch=B, hw=HW,
                               inv_temperature=1.0 / float(temperature))

    flops = 2 * (rows * kp * fp + n * rows * fp + n * fp * hp + n * hp * op + n * op * n)
    bytes_accessed = (patches.size * 2
                      + sum(int(v.size) * v.dtype.itemsize for v in params.values())
                      + 8 * LANE * 4)
    cost = pl.CostEstimate(flops=int(flops), transcendentals=int(n * n + 3 * n),
                           bytes_accessed=int(bytes_accessed))

    # TODO(synk): on v7x, split the two views across both TensorCores (grid=(2,) "parallel")
    # and tile the B*HW axis with pooled-feature accumulation before scaling batch/spatial
    # sizes beyond toy shapes (64 MiB VMEM on v7x).
    out = pl.pallas_call(
        kernel,
        out_shape=jax.ShapeDtypeStruct((8, LANE), jnp.float32),
        in_specs=[VMEM] * 7,
        out_specs=VMEM,
        compiler_params=pltpu.CompilerParams(vmem_limit_bytes=32 << 20),
        cost_estimate=cost,
    )(patches, params["wc"], params["bc"], params["w1"], params["b1"],
      params["w2"], params["b2"])
    return out[0, 0]


if __name__ == "__main__":
    # Small shapes: batch=2, channels=4, spatial=16x16; projector dims (32, 64, 32).
    B, C_in, H, W = 2, 4, 16, 16
    feat_dim, hidden_dim, proj_dim = 32, 64, 32

    key = jax.random.PRNGKey(0)
    k_x1, k_x2, k_wc, k_w1, k_w2 = jax.random.split(key, 5)

    X1 = jax.random.normal(k_x1, (B, C_in, H, W), dtype=jnp.float32)
    X2 = jax.random.normal(k_x2, (B, C_in, H, W), dtype=jnp.float32)

    w_conv = 0.1 * jax.random.normal(k_wc, (3, 3, C_in, feat_dim), dtype=jnp.float32)
    b_conv = jnp.full((feat_dim,), 0.01, dtype=jnp.float32)
    w1 = 0.1 * jax.random.normal(k_w1, (feat_dim, hidden_dim), dtype=jnp.float32)
    b1 = jnp.full((hidden_dim,), 0.01, dtype=jnp.float32)
    w2 = 0.1 * jax.random.normal(k_w2, (hidden_dim, proj_dim), dtype=jnp.float32)
    b2 = jnp.full((proj_dim,), 0.01, dtype=jnp.float32)

    params = prepare_params(w_conv, b_conv, w1, b1, w2, b2)

    loss = simclr_forward(X1, X2, params, temperature=0.1)
    jax.block_until_ready(loss)
    assert loss.shape == () and bool(jnp.isfinite(loss))
    print("KERNEL_OK")
</pallas_src>

<mosaic_0001>
module attributes {stable_mosaic.version = 11 : i64} {
  func.func @_fused_simclr_kernel(%arg0: memref<1024x128xbf16, #tpu.memory_space<vmem>>, %arg1: memref<128x128xbf16, #tpu.memory_space<vmem>>, %arg2: memref<1x128xf32, #tpu.memory_space<vmem>>, %arg3: memref<128x128xbf16, #tpu.memory_space<vmem>>, %arg4: memref<1x128xf32, #tpu.memory_space<vmem>>, %arg5: memref<128x128xbf16, #tpu.memory_space<vmem>>, %arg6: memref<1x128xf32, #tpu.memory_space<vmem>>, %arg7: memref<8x128xf32, #tpu.memory_space<vmem>>) attributes {dimension_semantics = [], scalar_prefetch = 0 : i64, scratch_operands = 0 : i64, tpu.core_type = #tpu.core_type<tc>} {
    %c0 = arith.constant 0 : index
    %c0_0 = arith.constant 0 : index
    %0 = vector.load %arg0[%c0, %c0_0] : memref<1024x128xbf16, #tpu.memory_space<vmem>>, vector<1024x128xbf16>
    %c0_1 = arith.constant 0 : index
    %c0_2 = arith.constant 0 : index
    %1 = vector.load %arg1[%c0_1, %c0_2] : memref<128x128xbf16, #tpu.memory_space<vmem>>, vector<128x128xbf16>
    %cst = arith.constant dense<0.000000e+00> : vector<1024x128xf32>
    %2 = tpu.matmul %0, %1, %cst {dimension_numbers = #tpu.dot_dimension_numbers<[1], [0], [0], [1], [0, 0, 1, 1], [], []>} : vector<1024x128xbf16>, vector<128x128xbf16>, vector<1024x128xf32> -> vector<1024x128xf32>
    %c0_3 = arith.constant 0 : index
    %c0_4 = arith.constant 0 : index
    %3 = vector.load %arg2[%c0_3, %c0_4] : memref<1x128xf32, #tpu.memory_space<vmem>>, vector<1x128xf32>
    %4 = vector.broadcast %3 : vector<1x128xf32> to vector<1024x128xf32>
    %5 = arith.addf %2, %4 : vector<1024x128xf32>
    %cst_5 = arith.constant 0.000000e+00 : f32
    %6 = vector.broadcast %cst_5 : f32 to vector<1024x128xf32>
    %7 = arith.maximumf %5, %6 : vector<1024x128xf32>
    %8 = tpu.iota {dimensions = array<i32: 0>} : vector<4x1024xi32>
    %9 = tpu.iota {dimensions = array<i32: 1>} : vector<4x1024xi32>
    %c256_i32 = arith.constant 256 : i32
    %10 = vector.broadcast %c256_i32 : i32 to vector<4x1024xi32>
    %11 = arith.muli %8, %10 : vector<4x1024xi32>
    %12 = arith.cmpi sge, %9, %11 : vector<4x1024xi32>
    %c1_i32 = arith.constant 1 : i32
    %13 = vector.broadcast %c1_i32 : i32 to vector<4x1024xi32>
    %14 = arith.addi %8, %13 : vector<4x1024xi32>
    %c256_i32_6 = arith.constant 256 : i32
    %15 = vector.broadcast %c256_i32_6 : i32 to vector<4x1024xi32>
    %16 = arith.muli %14, %15 : vector<4x1024xi32>
    %17 = arith.cmpi slt, %9, %16 : vector<4x1024xi32>
    %18 = arith.andi %12, %17 : vector<4x1024xi1>
    %cst_7 = arith.constant 3.906250e-03 : f32
    %cst_8 = arith.constant 0.000000e+00 : f32
    %19 = vector.broadcast %cst_7 : f32 to vector<4x1024xf32>
    %20 = vector.broadcast %cst_8 : f32 to vector<4x1024xf32>
    %21 = arith.select %18, %19, %20 : vector<4x1024xi1>, vector<4x1024xf32>
    %22 = arith.truncf %21 : vector<4x1024xf32> to vector<4x1024xbf16>
    %23 = arith.truncf %7 : vector<1024x128xf32> to vector<1024x128xbf16>
    %cst_9 = arith.constant dense<0.000000e+00> : vector<4x128xf32>
    %24 = tpu.matmul %22, %23, %cst_9 {dimension_numbers = #tpu.dot_dimension_numbers<[1], [0], [0], [1], [0, 0, 1, 1], [], []>} : vector<4x1024xbf16>, vector<1024x128xbf16>, vector<4x128xf32> -> vector<4x128xf32>
    %25 = arith.truncf %24 : vector<4x128xf32> to vector<4x128xbf16>
    %c0_10 = arith.constant 0 : index
    %c0_11 = arith.constant 0 : index
    %26 = vector.load %arg3[%c0_10, %c0_11] : memref<128x128xbf16, #tpu.memory_space<vmem>>, vector<128x128xbf16>
    %cst_12 = arith.constant dense<0.000000e+00> : vector<4x128xf32>
    %27 = tpu.matmul %25, %26, %cst_12 {dimension_numbers = #tpu.dot_dimension_numbers<[1], [0], [0], [1], [0, 0, 1, 1], [], []>} : vector<4x128xbf16>, vector<128x128xbf16>, vector<4x128xf32> -> vector<4x128xf32>
    %c0_13 = arith.constant 0 : index
    %c0_14 = arith.constant 0 : index
    %28 = vector.load %arg4[%c0_13, %c0_14] : memref<1x128xf32, #tpu.memory_space<vmem>>, vector<1x128xf32>
    %29 = vector.broadcast %28 : vector<1x128xf32> to vector<4x128xf32>
    %30 = arith.addf %27, %29 : vector<4x128xf32>
    %cst_15 = arith.constant 0.000000e+00 : f32
    %31 = vector.broadcast %cst_15 : f32 to vector<4x128xf32>
    %32 = arith.maximumf %30, %31 : vector<4x128xf32>
    %33 = arith.truncf %32 : vector<4x128xf32> to vector<4x128xbf16>
    %c0_16 = arith.constant 0 : index
    %c0_17 = arith.constant 0 : index
    %34 = vector.load %arg5[%c0_16, %c0_17] : memref<128x128xbf16, #tpu.memory_space<vmem>>, vector<128x128xbf16>
    %cst_18 = arith.constant dense<0.000000e+00> : vector<4x128xf32>
    %35 = tpu.matmul %33, %34, %cst_18 {dimension_numbers = #tpu.dot_dimension_numbers<[1], [0], [0], [1], [0, 0, 1, 1], [], []>} : vector<4x128xbf16>, vector<128x128xbf16>, vector<4x128xf32> -> vector<4x128xf32>
    %c0_19 = arith.constant 0 : index
    %c0_20 = arith.constant 0 : index
    %36 = vector.load %arg6[%c0_19, %c0_20] : memref<1x128xf32, #tpu.memory_space<vmem>>, vector<1x128xf32>
    %37 = vector.broadcast %36 : vector<1x128xf32> to vector<4x128xf32>
    %38 = arith.addf %35, %37 : vector<4x128xf32>
    %39 = arith.mulf %38, %38 : vector<4x128xf32>
    %cst_21 = arith.constant dense<0.000000e+00> : vector<4xf32>
    %40 = vector.multi_reduction <add>, %39, %cst_21 [1] : vector<4x128xf32> to vector<4xf32>
    %41 = vector.shape_cast %40 : vector<4xf32> to vector<4x1xf32>
    %cst_22 = arith.constant 9.99999996E-13 : f32
    %42 = vector.broadcast %cst_22 : f32 to vector<4x1xf32>
    %43 = arith.addf %41, %42 : vector<4x1xf32>
    %44 = math.rsqrt %43 : vector<4x1xf32>
    %45 = vector.broadcast %44 : vector<4x1xf32> to vector<4x128xf32>
    %46 = arith.mulf %38, %45 : vector<4x128xf32>
    %cst_23 = arith.constant dense<0.000000e+00> : vector<4x4xf32>
    %47 = tpu.matmul %46, %46, %cst_23 {dimension_numbers = #tpu.dot_dimension_numbers<[1], [1], [0], [0], [0, 0, 1, 0], [], []>} : vector<4x128xf32>, vector<4x128xf32>, vector<4x4xf32> -> vector<4x4xf32>
    %cst_24 = arith.constant 1.000000e+01 : f32
    %48 = vector.broadcast %cst_24 : f32 to vector<4x4xf32>
    %49 = arith.mulf %47, %48 : vector<4x4xf32>
    %50 = tpu.iota {dimensions = array<i32: 0>} : vector<4x4xi32>
    %51 = tpu.iota {dimensions = array<i32: 1>} : vector<4x4xi32>
    %52 = arith.cmpi eq, %50, %51 : vector<4x4xi32>
    %cst_25 = arith.constant -1.000000e+09 : f32
    %53 = vector.broadcast %cst_25 : f32 to vector<4x4xf32>
    %54 = arith.select %52, %53, %49 : vector<4x4xi1>, vector<4x4xf32>
    %c2_i32 = arith.constant 2 : i32
    %55 = vector.broadcast %c2_i32 : i32 to vector<4x4xi32>
    %56 = arith.addi %50, %55 : vector<4x4xi32>
    %c4_i32 = arith.constant 4 : i32
    %c0_i32 = arith.constant 0 : i32
    %57 = arith.cmpi eq, %c4_i32, %c0_i32 : i32
    %c1_i32_26 = arith.constant 1 : i32
    %58 = arith.select %57, %c1_i32_26, %c4_i32 : i32
    %59 = vector.broadcast %58 : i32 to vector<4x4xi32>
    %60 = arith.remsi %56, %59 : vector<4x4xi32>
    %c0_i32_27 = arith.constant 0 : i32
    %61 = vector.broadcast %c0_i32_27 : i32 to vector<4x4xi32>
    %62 = arith.cmpi ne, %60, %61 : vector<4x4xi32>
    %c0_i32_28 = arith.constant 0 : i32
    %63 = vector.broadcast %c0_i32_28 : i32 to vector<4x4xi32>
    %64 = arith.cmpi slt, %60, %63 : vector<4x4xi32>
    %c0_i32_29 = arith.constant 0 : i32
    %65 = arith.cmpi slt, %58, %c0_i32_29 : i32
    %66 = vector.broadcast %65 : i1 to vector<4x4xi1>
    %67 = vector.broadcast %66 : vector<4x4xi1> to vector<4x4xi1>
    %68 = arith.xori %64, %67 : vector<4x4xi1>
    %69 = arith.andi %68, %62 : vector<4x4xi1>
    %70 = vector.broadcast %58 : i32 to vector<4x4xi32>
    %71 = arith.addi %60, %70 : vector<4x4xi32>
    %72 = arith.select %69, %71, %60 : vector<4x4xi1>, vector<4x4xi32>
    %73 = arith.cmpi eq, %51, %72 : vector<4x4xi32>
    %cst_30 = arith.constant 0.000000e+00 : f32
    %74 = vector.broadcast %cst_30 : f32 to vector<4x4xf32>
    %75 = arith.select %73, %54, %74 : vector<4x4xi1>, vector<4x4xf32>
    %cst_31 = arith.constant dense<0.000000e+00> : vector<4xf32>
    %76 = vector.multi_reduction <add>, %75, %cst_31 [1] : vector<4x4xf32> to vector<4xf32>
    %77 = vector.shape_cast %76 : vector<4xf32> to vector<4x1xf32>
    %cst_32 = arith.constant dense<0xFF800000> : vector<4xf32>
    %78 = vector.multi_reduction <maximumf>, %54, %cst_32 [1] : vector<4x4xf32> to vector<4xf32>
    %79 = vector.shape_cast %78 : vector<4xf32> to vector<4x1xf32>
    %80 = vector.broadcast %79 : vector<4x1xf32> to vector<4x4xf32>
    %81 = arith.subf %54, %80 : vector<4x4xf32>
    %82 = math.exp %81 : vector<4x4xf32>
    %cst_33 = arith.constant dense<0.000000e+00> : vector<4xf32>
    %83 = vector.multi_reduction <add>, %82, %cst_33 [1] : vector<4x4xf32> to vector<4xf32>
    %84 = vector.shape_cast %83 : vector<4xf32> to vector<4x1xf32>
    %85 = math.log %84 : vector<4x1xf32>
    %86 = arith.addf %79, %85 : vector<4x1xf32>
    %87 = arith.subf %86, %77 : vector<4x1xf32>
    %88 = vector.shape_cast %87 : vector<4x1xf32> to vector<1x4x1xf32>
    %cst_34 = arith.constant dense<0.000000e+00> : vector<1xf32>
    %89 = vector.multi_reduction <add>, %88, %cst_34 [1, 2] : vector<1x4x1xf32> to vector<1xf32>
    %90 = vector.shape_cast %89 : vector<1xf32> to vector<1x1x1xf32>
    %91 = vector.extract %90[0, 0, 0] : f32 from vector<1x1x1xf32>
    %92 = vector.broadcast %91 : f32 to vector<1x1xf32>
    %cst_35 = arith.constant 4.000000e+00 : f32
    %93 = vector.broadcast %cst_35 : f32 to vector<1x1xf32>
    %94 = arith.divf %92, %93 : vector<1x1xf32>
    %95 = vector.shape_cast %94 : vector<1x1xf32> to vector<1x1xf32>
    %96 = vector.broadcast %95 : vector<1x1xf32> to vector<8x128xf32>
    %c0_36 = arith.constant 0 : index
    %c0_37 = arith.constant 0 : index
    %97 = vector.load %arg7[%c0_36, %c0_37] : memref<8x128xf32, #tpu.memory_space<vmem>>, vector<8x128xf32>
    tpu.vector_store %arg7[%c0_36, %c0_37], %96 {strides = array<i32>} : memref<8x128xf32, #tpu.memory_space<vmem>>, vector<8x128xf32>,
    return
  }
}

</mosaic_0001>

<bundles_post_ra>
// kernel: tpu_custom_call.1
= control target key start
LH: loop header
LB: loop body
LE: loop exit
PB: predicated region body
PF: predicated region fallthrough
CT: control target
= control target key end

     0   :  { %12 = vsyncpa [#allocation3], 0  ;;  %s3206_s0 = inlined_call_operand.hbm [shape: bf16[1024,128], index: 0, kind: input, shape index: {}]   ;;  %s3207_s1 = inlined_call_operand.hbm [shape: bf16[128,128], index: 1, kind: input, shape index: {}]   ;;  %s3208_s2 = inlined_call_operand.vmem [shape: f32[1,128], index: 2, kind: input, shape index: {}]   ;;  %s3209_s3 = inlined_call_operand.hbm [shape: bf16[128,128], index: 3, kind: input, shape index: {}]   ;;  %s3210_s4 = inlined_call_operand.vmem [shape: f32[1,128], index: 4, kind: input, shape index: {}]   ;;  %s3211_s5 = inlined_call_operand.hbm [shape: bf16[128,128], index: 5, kind: input, shape index: {}]   ;;  %s3212_s6 = inlined_call_operand.vmem [shape: f32[1,128], index: 6, kind: input, shape index: {}]   ;;  %s3213_s7 = inlined_call_operand.hbm [shape: f32[8,128], index: 7, kind: output, shape index: {}]  }
   0x1   :  { %13 = vsyncpa [#allocation6], 0 }
   0x2   :  { %14 = vsyncpa [#allocation9], 0 }
   0x3   :  { %15 = vsyncpa [#allocation4], 0  ;;  %s2704_s24 = smov [#allocation5]   ;;  %s2705_s26 = smov [#allocation2]  }
   0x4   :  { %s33_s25 = sshll.u32 %s2704_s24, 4  ;;  %s21_s27 = sshll.u32 %s2705_s26, 4  ;;  %s34_s25 = int_to_ptr.vmem [resolvable:$true] %s33_s25  ;;  %s2754_s27 = int_to_ptr.vmem [resolvable:$true] %s21_s27 }
   0x5   :  { %s2586_s30 = scalar_lea.hbm %s3207_s1, 1024 }
   0x6   :  { %p2587_p0 = scmp.ne.s32.totalorder %s3207_s1, %s2586_s30  ;;  %p2590_p1 = scmp.lt.u32.totalorder %s2586_s30, %s3207_s1 }
   0x8   :  { %p2592_p2 = pnand %p2590_p1, %p2587_p0 }
   0xa   :  { %2595 = shalt.err (!%p2592_p2)
}
   0xb   :  { %s2596_s12 = scalar_lea.vmem %s34_s25, 1024  ;;  %p2601_p4 = scmp.lt.s32.totalorder %s34_s25, %s34_s25 }
   0xc   :  { %p2597_p3 = scmp.ne.s32.totalorder %s34_s25, %s2596_s12  ;;  %p2602_p5 = scmp.lt.s32.totalorder %s2596_s12, %s2596_s12 }
   0xe   :  { %p2603_p6 = por %p2602_p5, %p2601_p4 }
  0x10   :  { %p2604_p7 = pnand %p2603_p6, %p2597_p3 }
  0x12   :  { %2607 = shalt.err (!%p2604_p7)
}
  0x13   :  { %s2706_s13 = smov 64   ;;  %s2707_s14 = smov 4  }
  0x14   :  { %39 = dma.hbm_to_vmem [thread:$0]  %s3207_s1, 1024, %s34_s25, [#allocation6], %s2706_s13, %s2706_s13, %s2707_s14  }
  0x15   :  { %s2608_s19 = scalar_lea.hbm %s3206_s0, 8192 }
  0x16   :  { %p2609_p8 = scmp.ne.s32.totalorder %s3206_s0, %s2608_s19  ;;  %p2612_p9 = scmp.lt.u32.totalorder %s2608_s19, %s3206_s0 }
  0x18   :  { %p2614_p10 = pnand %p2612_p9, %p2609_p8 }
  0x1a   :  { %2617 = shalt.err (!%p2614_p10)
}
  0x1b   :  { %s2618_s24 = scalar_lea.vmem %s2754_s27, 8192  ;;  %p2623_p12 = scmp.lt.s32.totalorder %s2754_s27, %s2754_s27 }
  0x1c   :  { %p2619_p11 = scmp.ne.s32.totalorder %s2754_s27, %s2618_s24  ;;  %p2624_p13 = scmp.lt.s32.totalorder %s2618_s24, %s2618_s24 }
  0x1e   :  { %p2625_p0 = por %p2624_p13, %p2623_p12 }
  0x20   :  { %p2626_p1 = pnand %p2625_p0, %p2619_p11 }
  0x22   :  { %2629 = shalt.err (!%p2626_p1)
}
  0x23   :  { %27 = dma.hbm_to_vmem [thread:$0]  %s3206_s0, 8192, %s2754_s27, [#allocation3], %s2706_s13, %s2706_s13, %s2707_s14  }
  0x24   :  { %s2708_s26 = smov [#allocation7]   ;;  %s2709_s29 = smov [#allocation8]  }
  0x25   :  { %s47_s28 = sshll.u32 %s2708_s26, 4  ;;  %s61_s30 = sshll.u32 %s2709_s29, 4  ;;  %s48_s28 = int_to_ptr.vmem [resolvable:$true] %s47_s28  ;;  %s2791_s30 = int_to_ptr.vmem [resolvable:$true] %s61_s30 }
  0x26   :  { %s2630_s10 = scalar_lea.hbm %s3209_s3, 1024 }
  0x27   :  { %p2631_p2 = scmp.ne.s32.totalorder %s3209_s3, %s2630_s10  ;;  %p2634_p3 = scmp.lt.u32.totalorder %s2630_s10, %s3209_s3 }
  0x29   :  { %p2636_p4 = pnand %p2634_p3, %p2631_p2 }
  0x2b   :  { %2639 = shalt.err (!%p2636_p4)
}
  0x2c   :  { %s2640_s0 = scalar_lea.vmem %s48_s28, 1024  ;;  %p2645_p6 = scmp.lt.s32.totalorder %s48_s28, %s48_s28 }
  0x2d   :  { %p2641_p5 = scmp.ne.s32.totalorder %s48_s28, %s2640_s0  ;;  %p2646_p7 = scmp.lt.s32.totalorder %s2640_s0, %s2640_s0 }
  0x2f   :  { %p2647_p8 = por %p2646_p7, %p2645_p6 }
  0x31   :  { %p2648_p9 = pnand %p2647_p8, %p2641_p5 }
  0x33   :  { %2651 = shalt.err (!%p2648_p9)
}
  0x34   :  { %53 = dma.hbm_to_vmem [thread:$0]  %s3209_s3, 1024, %s48_s28, [#allocation6], %s2706_s13, %s2706_s13, %s2707_s14  }
  0x35   :  { %s2652_s20 = scalar_lea.hbm %s3211_s5, 1024 }
  0x36   :  { %p2653_p10 = scmp.ne.s32.totalorder %s3211_s5, %s2652_s20  ;;  %p2656_p11 = scmp.lt.u32.totalorder %s2652_s20, %s3211_s5 }
  0x38   :  { %p2658_p12 = pnand %p2656_p11, %p2653_p10 }
  0x3a   :  { %2661 = shalt.err (!%p2658_p12)
}
  0x3b   :  { %s2662_s1 = scalar_lea.vmem %s2791_s30, 1024  ;;  %p2667_p0 = scmp.lt.s32.totalorder %s2791_s30, %s2791_s30 }
  0x3c   :  { %p2663_p13 = scmp.ne.s32.totalorder %s2791_s30, %s2662_s1  ;;  %p2668_p1 = scmp.lt.s32.totalorder %s2662_s1, %s2662_s1 }
  0x3e   :  { %p2669_p2 = por %p2668_p1, %p2667_p0 }
  0x40   :  { %p2670_p3 = pnand %p2669_p2, %p2663_p13 }
  0x42   :  { %2673 = shalt.err (!%p2670_p3)
}
  0x43   :  { %67 = dma.hbm_to_vmem [thread:$0]  %s3211_s5, 1024, %s2791_s30, [#allocation9], %s2706_s13, %s2706_s13, %s2707_s14  }
  0x44   :  { %2696 = dma.done.wait [#allocation3], 8192  }
  0x45   :  { %2697 = vsyncadd [#allocation3], 4294959104 }
  0x46   :  { %2698 = dma.done.wait [#allocation6], 2048  }
  0x47   :  { %2699 = vsyncadd [#allocation6], 4294965248 }
  0x48   :  { %2700 = dma.done.wait [#allocation9], 1024  }
  0x49   :  { %2701 = vsyncadd [#allocation9], 4294966272  ;;  %v2491_v0 = vld [vmem:[#allocation5] sm:$0xff]   ;;  %v2492_v1 = vld [vmem:[#allocation5 + $0x8] sm:$0xff]  }
  0x4a   :  { %2274 = vmatprep.subr.bf16.mxu0 %v2491_v0  ;;  %2463 = vmatprep.subr.bf16.mxu1 %v2491_v0  ;;  %v2493_v2 = vld [vmem:[#allocation5 + $0x10] sm:$0xff]   ;;  %v2494_v3 = vld [vmem:[#allocation5 + $0x18] sm:$0xff]   ;;  %v2499_v4 = vld [vmem:[#allocation2] sm:$0xff]  }
  0x4b   :  { %2275 = vmatpush3.bf16.msra.mxu0 %v2491_v0  ;;  %2471 = vmatpush3.bf16.msra.mxu1 %v2491_v0  ;;  %v2495_v5 = vld [vmem:[#allocation5 + $0x20] sm:$0xff]   ;;  %v2496_v6 = vld [vmem:[#allocation5 + $0x28] sm:$0xff]   ;;  %v2497_v7 = vld [vmem:[#allocation5 + $0x30] sm:$0xff]  }
  0x4c   :  { %2276 = vmatprep.subr.bf16.mxu0 %v2492_v1  ;;  %2464 = vmatprep.subr.bf16.mxu1 %v2492_v1  ;;  %v2498_v8 = vld [vmem:[#allocation5 + $0x38] sm:$0xff]   ;;  %v2500_v9 = vld [vmem:[#allocation2 + $0x8] sm:$0xff]   ;;  %v2501_v10 = vld [vmem:[#allocation2 + $0x10] sm:$0xff]  }
  0x4d   :  { %2290 = vmatprep.mubr.bf16.mxu0 %v2499_v4  ;;  %v2502_v11 = vld [vmem:[#allocation2 + $0x18] sm:$0xff]   ;;  %v2503_v12 = vld [vmem:[#allocation2 + $0x20] sm:$0xff]   ;;  %v2504_v13 = vld [vmem:[#allocation2 + $0x28] sm:$0xff]  }
  0x4e   :  { %v2505_v14 = vld [vmem:[#allocation2 + $0x30] sm:$0xff]   ;;  %v2506_v15 = vld [vmem:[#allocation2 + $0x38] sm:$0xff]   ;;  %v2507_v16 = vld [vmem:[#allocation2 + $0x40] sm:$0xff]  }
  0x4f   :  { %2277 = vmatpush3.bf16.msra.mxu0 %v2492_v1  ;;  %2472 = vmatpush3.bf16.msra.mxu1 %v2492_v1  ;;  %v2508_v17 = vld [vmem:[#allocation2 + $0x48] sm:$0xff]   ;;  %v2509_v18 = vld [vmem:[#allocation2 + $0x50] sm:$0xff]   ;;  %v2510_v19 = vld [vmem:[#allocation2 + $0x58] sm:$0xff]   ;;  %v1339_v1 = vlaneseq }
  0x50   :  { %2278 = vmatprep.subr.bf16.mxu0 %v2493_v2  ;;  %2465 = vmatprep.subr.bf16.mxu1 %v2493_v2  ;;  %v2511_v20 = vld [vmem:[#allocation2 + $0x60] sm:$0xff]   ;;  %v2512_v21 = vld [vmem:[#allocation2 + $0x68] sm:$0xff]   ;;  %v2513_v22 = vld [vmem:[#allocation2 + $0x70] sm:$0xff]  }
  0x51   :  { %v2545_v23 = vld [vmem:[#allocation2 + $0x1b0] sm:$0xff]   ;;  %v2546_v24 = vld [vmem:[#allocation2 + $0x1b8] sm:$0xff]   ;;  %v2515_v26 = vld [vmem:[#allocation2 + $0x80] sm:$0xff]  }
  0x52   :  { %2398 = vmatprep.mubr.bf16.mxu1 %v2545_v23  ;;  %v2514_v25 = vld [vmem:[#allocation2 + $0x78] sm:$0xff]   ;;  %v2549_v27 = vld [vmem:[#allocation2 + $0x1c0] sm:$0xff]   ;;  %v2550_v28 = vld [vmem:[#allocation2 + $0x1c8] sm:$0xff]  }
  0x53   :  { %2279 = vmatpush3.bf16.msra.mxu0 %v2493_v2  ;;  %2473 = vmatpush3.bf16.msra.mxu1 %v2493_v2  ;;  %v2516_v29 = vld [vmem:[#allocation2 + $0x88] sm:$0xff]   ;;  %v2517_v30 = vld [vmem:[#allocation2 + $0x90] sm:$0xff]   ;;  %v2554_v32 = vld [vmem:[#allocation2 + $0x1d8] sm:$0xff]  }
  0x54   :  { %2280 = vmatprep.subr.bf16.mxu0 %v2494_v3  ;;  %2466 = vmatprep.subr.bf16.mxu1 %v2494_v3  ;;  %v2553_v31 = vld [vmem:[#allocation2 + $0x1d0] sm:$0xff]   ;;  %v2518_v33 = vld [vmem:[#allocation2 + $0x98] sm:$0xff]   ;;  %v2519_v34 = vld [vmem:[#allocation2 + $0xa0] sm:$0xff]  }
  0x55   :  { %v2557_v35 = vld [vmem:[#allocation2 + $0x1e0] sm:$0xff]   ;;  %v2558_v36 = vld [vmem:[#allocation2 + $0x1e8] sm:$0xff]   ;;  %v2521_v38 = vld [vmem:[#allocation2 + $0xb0] sm:$0xff]  }
  0x56   :  { %v2520_v37 = vld [vmem:[#allocation2 + $0xa8] sm:$0xff]   ;;  %v2561_v39 = vld [vmem:[#allocation2 + $0x1f0] sm:$0xff]   ;;  %v2562_v40 = vld [vmem:[#allocation2 + $0x1f8] sm:$0xff]  }
  0x57   :  { %2281 = vmatpush3.bf16.msra.mxu0 %v2494_v3  ;;  %2474 = vmatpush3.bf16.msra.mxu1 %v2494_v3  ;;  %v2522_v41 = vld [vmem:[#allocation2 + $0xb8] sm:$0xff]   ;;  %v2523_v42 = vld [vmem:[#allocation2 + $0xc0] sm:$0xff]   ;;  %v2524_v43 = vld [vmem:[#allocation2 + $0xc8] sm:$0xff]   ;;  %v2828_v3 = vshrl.u32 %v1339_v1, 7 }
  0x58   :  { %2282 = vmatprep.subr.bf16.mxu0 %v2495_v5  ;;  %2467 = vmatprep.subr.bf16.mxu1 %v2495_v5  ;;  %v2525_v44 = vld [vmem:[#allocation2 + $0xd0] sm:$0xff]   ;;  %v2526_v45 = vld [vmem:[#allocation2 + $0xd8] sm:$0xff]   ;;  %v2527_v46 = vld [vmem:[#allocation2 + $0xe0] sm:$0xff]  }
  0x59   :  { %v2528_v47 = vld [vmem:[#allocation2 + $0xe8] sm:$0xff]   ;;  %v2529_v48 = vld [vmem:[#allocation2 + $0xf0] sm:$0xff]   ;;  %v2530_v49 = vld [vmem:[#allocation2 + $0xf8] sm:$0xff]  }
  0x5a   :  { %v2531_v50 = vld [vmem:[#allocation2 + $0x100] sm:$0xff]   ;;  %v2532_v51 = vld [vmem:[#allocation2 + $0x108] sm:$0xff]   ;;  %v2533_v52 = vld [vmem:[#allocation2 + $0x110] sm:$0xff]  }
  0x5b   :  { %2283 = vmatpush3.bf16.msra.mxu0 %v2495_v5  ;;  %2475 = vmatpush3.bf16.msra.mxu1 %v2495_v5  ;;  %v2534_v53 = vld [vmem:[#allocation2 + $0x118] sm:$0xff]   ;;  %v2535_v54 = vld [vmem:[#allocation2 + $0x120] sm:$0xff]   ;;  %v2536_v55 = vld [vmem:[#allocation2 + $0x128] sm:$0xff]   ;;  %v2830_v5 = vand.u32 127, %v1339_v1 }
  0x5c   :  { %2284 = vmatprep.subr.bf16.mxu0 %v2496_v6  ;;  %2468 = vmatprep.subr.bf16.mxu1 %v2496_v6  ;;  %v2537_v56 = vld [vmem:[#allocation2 + $0x130] sm:$0xff]   ;;  %v2538_v57 = vld [vmem:[#allocation2 + $0x138] sm:$0xff]   ;;  %v2539_v58 = vld [vmem:[#allocation2 + $0x140] sm:$0xff]  }
  0x5d   :  { %v2540_v59 = vld [vmem:[#allocation2 + $0x148] sm:$0xff]   ;;  %v2541_v60 = vld [vmem:[#allocation2 + $0x150] sm:$0xff]   ;;  %v2542_v61 = vld [vmem:[#allocation2 + $0x158] sm:$0xff]  }
  0x5e   :  { %v2543_v62 = vld [vmem:[#allocation2 + $0x160] sm:$0xff]   ;;  %v2544_v63 = vld [vmem:[#allocation2 + $0x168] sm:$0xff]   ;;  %v2547_v0 = vld [vmem:[#allocation2 + $0x170] sm:$0xff]  }
  0x5f   :  { %2285 = vmatpush3.bf16.msra.mxu0 %v2496_v6  ;;  %2476 = vmatpush3.bf16.msra.mxu1 %v2496_v6  ;;  %v2548_v2 = vld [vmem:[#allocation2 + $0x178] sm:$0xff]   ;;  %v2551_v4 = vld [vmem:[#allocation2 + $0x180] sm:$0xff]   ;;  %v1359_v6 = vadd.s32 1, %v2828_v3 }
  0x60   :  { %2286 = vmatprep.subr.bf16.mxu0 %v2497_v7  ;;  %2469 = vmatprep.subr.bf16.mxu1 %v2497_v7 }
  0x63   :  { %2287 = vmatpush3.bf16.msra.mxu0 %v2497_v7  ;;  %2477 = vmatpush3.bf16.msra.mxu1 %v2497_v7  ;;  %v1343_v7 = vadd.s32 128, %v2830_v5 }
  0x64   :  { %2288 = vmatprep.subr.bf16.mxu0 %v2498_v8  ;;  %2470 = vmatprep.subr.bf16.mxu1 %v2498_v8 }
  0x67   :  { %2289 = vmatpush3.bf16.msra.mxu0 %v2498_v8  ;;  %2478 = vmatpush3.bf16.msra.mxu1 %v2498_v8  ;;  %v2835_v8 = vmul.u32 256, %v2828_v3 }
  0x69   :  { %vm1352_vm0 = vcmp.ge.s32.totalorder %v1343_v7, %v2835_v8  ;;  %vm1351_vm4 = vcmp.ge.s32.totalorder %v2830_v5, %v2835_v8 }
  0x6a   :  { %2291 = vmatmul.mubr.bf16.vlgmr.msra.gmra.mrb[0].mxu0 %v2500_v9  ;;  %2399 = vmatmul.mubr.bf16.vlgmr.msra.gmra.mrb[0].mxu1 %v2546_v24  ;;  %v2837_v9 = vmul.u32 256, %v1359_v6 }
  0x6b   :  { %2294 = vmatprep.mubr.bf16.mxu0 %v2501_v10  ;;  %2402 = vmatprep.mubr.bf16.mxu1 %v2549_v27  ;;  %v2552_v10 = vld [vmem:[#allocation2 + $0x188] sm:$0xff]  }
  0x6c   :  { %vm1362_vm1 = vcmp.lt.s32.totalorder %v1343_v7, %v2837_v9  ;;  %vm1361_vm5 = vcmp.lt.s32.totalorder %v2830_v5, %v2837_v9 }
  0x6d   :  { %vm1370_vm2 = vmand %vm1352_vm0, %vm1362_vm1 }
  0x6e   :  { %vm2060_vm3 = vmpackc.low %vm1370_vm2, %vm1370_vm2 }
  0x6f   :  { %vm2931_vm8 = vmand %vm1351_vm4, %vm1361_vm5 }
  0x70   :  { %vm2062_vm10 = vmpackc.low %vm2931_vm8, %vm2931_vm8 }
  0x72   :  { %2295 = vmatmul.mubr.bf16.gmra.mrb[4].mxu0 %v2502_v11  ;;  %2403 = vmatmul.mubr.bf16.gmra.mrb[4].mxu1 %v2550_v28  ;;  %v2555_v11 = vld [vmem:[#allocation2 + $0x190] sm:$0xff]  }
  0x73   :  { %2298 = vmatprep.mubr.bf16.mxu0 %v2503_v12  ;;  %2406 = vmatprep.mubr.bf16.mxu1 %v2553_v31  ;;  %v2710_v12 = vmov 0.00390625|0.00390625  }
  0x7a   :  { %2299 = vmatmul.mubr.bf16.gmra.mrb[8].mxu0 %v2504_v13  ;;  %2407 = vmatmul.mubr.bf16.gmra.mrb[8].mxu1 %v2554_v32  ;;  %v2556_v13 = vld [vmem:[#allocation2 + $0x198] sm:$0xff]  }
  0x7b   :  { %2302 = vmatprep.mubr.bf16.mxu0 %v2505_v14  ;;  %2410 = vmatprep.mubr.bf16.mxu1 %v2557_v35  ;;  %v2559_v14 = vld [vmem:[#allocation2 + $0x1a0] sm:$0xff]  }
  0x82   :  { %2303 = vmatmul.mubr.bf16.gmra.mrb[12].mxu0 %v2506_v15  ;;  %2411 = vmatmul.mubr.bf16.gmra.mrb[12].mxu1 %v2558_v36  ;;  %v2560_v15 = vld [vmem:[#allocation2 + $0x1a8] sm:$0xff]  }
  0x83   :  { %2306 = vmatprep.mubr.bf16.mxu0 %v2507_v16  ;;  %2414 = vmatprep.mubr.bf16.mxu1 %v2561_v39  ;;  %v2845_v16 = vld [vmem:[%s3208_s2] ss:$0 sm:$0xff] }
  0x8a   :  { %2307 = vmatmul.mubr.bf16.gmra.mrb[16].mxu0 %v2508_v17  ;;  %2415 = vmatmul.mubr.bf16.gmra.mrb[16].mxu1 %v2562_v40 }
  0x8b   :  { %2310 = vmatprep.mubr.bf16.mxu0 %v2509_v18  ;;  %2061 = vmatprep.mubr.msk.bf16.mxu1 %vm2060_vm3, %v2710_v12 }
  0x92   :  { %2311 = vmatmul.mubr.bf16.gmra.mrb[20].mxu0 %v2510_v19 }
  0x93   :  { %2314 = vmatprep.mubr.bf16.mxu0 %v2511_v20 }
  0x9a   :  { %2315 = vmatmul.mubr.bf16.gmra.mrb[24].mxu0 %v2512_v21 }
  0x9b   :  { %2318 = vmatprep.mubr.bf16.mxu0 %v2513_v22 }
  0xa2   :  { %2319 = vmatmul.mubr.bf16.gmra.mrb[28].mxu0 %v2514_v25 }
  0xa3   :  { %2322 = vmatprep.mubr.bf16.mxu0 %v2515_v26 }
  0xaa   :  { %2323 = vmatmul.mubr.bf16.gmra.mrb[32].mxu0 %v2516_v29 }
  0xab   :  { %2326 = vmatprep.mubr.bf16.mxu0 %v2517_v30 }
  0xb2   :  { %2327 = vmatmul.mubr.bf16.gmra.mrb[36].mxu0 %v2518_v33 }
  0xb3   :  { %2330 = vmatprep.mubr.bf16.mxu0 %v2519_v34 }
  0xba   :  { %2331 = vmatmul.mubr.bf16.gmra.mrb[40].mxu0 %v2520_v37 }
  0xbb   :  { %2334 = vmatprep.mubr.bf16.mxu0 %v2521_v38 }
  0xc2   :  { %2335 = vmatmul.mubr.bf16.gmra.mrb[44].mxu0 %v2522_v41 }
  0xc3   :  { %2338 = vmatprep.mubr.bf16.mxu0 %v2523_v42 }
  0xca   :  { %2339 = vmatmul.mubr.bf16.gmra.mrb[48].mxu0 %v2524_v43 }
  0xcb   :  { %2342 = vmatprep.mubr.bf16.mxu0 %v2525_v44 }
  0xd2   :  { %2343 = vmatmul.mubr.bf16.gmra.mrb[52].mxu0 %v2526_v45 }
  0xd3   :  { %2346 = vmatprep.mubr.bf16.mxu0 %v2527_v46 }
  0xda   :  { %2347 = vmatmul.mubr.bf16.gmra.mrb[56].mxu0 %v2528_v47 }
  0xdb   :  { %2350 = vmatprep.mubr.bf16.mxu0 %v2529_v48 }
  0xe2   :  { %2351 = vmatmul.mubr.bf16.gmra.mrb[60].mxu0 %v2530_v49 }
  0xe3   :  { %2354 = vmatprep.mubr.bf16.mxu0 %v2531_v50 }
  0xea   :  { %2355 = vmatmul.mubr.bf16.gmra.mrb[64].mxu0 %v2532_v51 }
  0xeb   :  { %2358 = vmatprep.mubr.bf16.mxu0 %v2533_v52 }
  0xf2   :  { %2359 = vmatmul.mubr.bf16.gmra.mrb[68].mxu0 %v2534_v53 }
  0xf3   :  { %2362 = vmatprep.mubr.bf16.mxu0 %v2535_v54 }
  0xfa   :  { %2363 = vmatmul.mubr.bf16.gmra.mrb[72].mxu0 %v2536_v55 }
  0xfb   :  { %2366 = vmatprep.mubr.bf16.mxu0 %v2537_v56 }
 0x102   :  { %2367 = vmatmul.mubr.bf16.gmra.mrb[76].mxu0 %v2538_v57 }
 0x103   :  { %2370 = vmatprep.mubr.bf16.mxu0 %v2539_v58 }
 0x10a   :  { %2371 = vmatmul.mubr.bf16.gmra.mrb[80].mxu0 %v2540_v59 }
 0x10b   :  { %2374 = vmatprep.mubr.bf16.mxu0 %v2541_v60 }
 0x112   :  { %2375 = vmatmul.mubr.bf16.gmra.mrb[84].mxu0 %v2542_v61 }
 0x113   :  { %2378 = vmatprep.mubr.bf16.mxu0 %v2543_v62 }
 0x11a   :  { %2379 = vmatmul.mubr.bf16.gmra.mrb[88].mxu0 %v2544_v63 }
 0x11b   :  { %2382 = vmatprep.mubr.bf16.mxu0 %v2547_v0 }
 0x122   :  { %2383 = vmatmul.mubr.bf16.gmra.mrb[92].mxu0 %v2548_v2 }
 0x123   :  { %2386 = vmatprep.mubr.bf16.mxu0 %v2551_v4 }
 0x12a   :  { %2387 = vmatmul.mubr.bf16.gmra.mrb[96].mxu0 %v2552_v10 }
 0x12b   :  { %2390 = vmatprep.mubr.bf16.mxu0 %v2555_v11 }
 0x132   :  { %2391 = vmatmul.mubr.bf16.gmra.mrb[100].mxu0 %v2556_v13 }
 0x133   :  { %2394 = vmatprep.mubr.bf16.mxu0 %v2559_v14 }
 0x13a   :  { %2395 = vmatmul.mubr.bf16.gmra.mrb[104].mxu0 %v2560_v15 }
 0x13d   :  { %v2292_v17 = vpop.f32.mrb[0].mxu0 }
 0x13e   :  { %v709_v18 = vadd.f32 %v2292_v17, %v2845_v16  ;;  %v700_v19 = vpop.f32.mrb[1].mxu0 }
 0x13f   :  { %v701_v20 = vadd.f32 %v2845_v16, %v700_v19  ;;  %v2293_v21 = vpop.f32.mrb[2].mxu0 }
 0x140   :  { %v712_v22 = vadd.f32 %v2293_v21, %v2845_v16  ;;  %v703_v23 = vpop.f32.mrb[3].mxu0  ;;  %v1213_v25 = vmax.f32 %v709_v18, 0.0 }
 0x141   :  { %v704_v24 = vadd.f32 %v2845_v16, %v703_v23  ;;  %v1211_v27 = vmax.f32 %v701_v20, 0.0 }
 0x142   :  { %v1214_v26 = vmax.f32 %v712_v22, 0.0 }
 0x143   :  { %v1212_v28 = vmax.f32 %v704_v24, 0.0 }
 0x144   :  { %v2851_v29 = vpack.c.bf16 %v1214_v26, %v1213_v25 }
 0x145   :  { %v2853_v30 = vpack.c.bf16 %v1212_v28, %v1211_v27  ;;  %v2296_v31 = vpop.f32.mrb[4].mxu0 }
 0x146   :  { %v725_v32 = vadd.f32 %v2296_v31, %v2845_v16  ;;  %v716_v33 = vpop.f32.mrb[5].mxu0 }
 0x147   :  { %v717_v34 = vadd.f32 %v2845_v16, %v716_v33  ;;  %v2297_v35 = vpop.f32.mrb[6].mxu0 }
 0x148   :  { %v728_v36 = vadd.f32 %v2297_v35, %v2845_v16  ;;  %v719_v37 = vpop.f32.mrb[7].mxu0  ;;  %v1217_v39 = vmax.f32 %v725_v32, 0.0 }
 0x149   :  { %v720_v38 = vadd.f32 %v2845_v16, %v719_v37  ;;  %v1215_v41 = vmax.f32 %v717_v34, 0.0 }
 0x14a   :  { %v1218_v40 = vmax.f32 %v728_v36, 0.0 }
 0x14b   :  { %v1216_v42 = vmax.f32 %v720_v38, 0.0 }
 0x14c   :  { %v2859_v43 = vpack.c.bf16 %v1218_v40, %v1217_v39 }
 0x14d   :  { %v2861_v44 = vpack.c.bf16 %v1216_v42, %v1215_v41  ;;  %v2300_v45 = vpop.f32.mrb[8].mxu0 }
 0x14e   :  { %v741_v46 = vadd.f32 %v2300_v45, %v2845_v16  ;;  %v732_v47 = vpop.f32.mrb[9].mxu0 }
 0x14f   :  { %v733_v48 = vadd.f32 %v2845_v16, %v732_v47  ;;  %v2301_v49 = vpop.f32.mrb[10].mxu0 }
 0x150   :  { %v744_v50 = vadd.f32 %v2301_v49, %v2845_v16  ;;  %v735_v51 = vpop.f32.mrb[11].mxu0  ;;  %v1221_v53 = vmax.f32 %v741_v46, 0.0 }
 0x151   :  { %v736_v52 = vadd.f32 %v2845_v16, %v735_v51  ;;  %v1219_v55 = vmax.f32 %v733_v48, 0.0 }
 0x152   :  { %v1222_v54 = vmax.f32 %v744_v50, 0.0 }
 0x153   :  { %v1220_v56 = vmax.f32 %v736_v52, 0.0 }
 0x154   :  { %v2867_v57 = vpack.c.bf16 %v1222_v54, %v1221_v53 }
 0x155   :  { %v2869_v58 = vpack.c.bf16 %v1220_v56, %v1219_v55  ;;  %v2304_v59 = vpop.f32.mrb[12].mxu0 }
 0x156   :  { %v757_v60 = vadd.f32 %v2304_v59, %v2845_v16  ;;  %v748_v61 = vpop.f32.mrb[13].mxu0 }
 0x157   :  { %v749_v62 = vadd.f32 %v2845_v16, %v748_v61  ;;  %v2305_v63 = vpop.f32.mrb[14].mxu0 }
 0x158   :  { %v760_v0 = vadd.f32 %v2305_v63, %v2845_v16  ;;  %v751_v1 = vpop.f32.mrb[15].mxu0  ;;  %v1225_v4 = vmax.f32 %v757_v60, 0.0 }
 0x159   :  { %v752_v2 = vadd.f32 %v2845_v16, %v751_v1  ;;  %v1223_v7 = vmax.f32 %v749_v62, 0.0 }
 0x15a   :  { %v1226_v6 = vmax.f32 %v760_v0, 0.0 }
 0x15b   :  { %v1224_v10 = vmax.f32 %v752_v2, 0.0 }
 0x15c   :  { %v2875_v11 = vpack.c.bf16 %v1226_v6, %v1225_v4 }
 0x15d   :  { %v2877_v13 = vpack.c.bf16 %v1224_v10, %v1223_v7  ;;  %v2308_v14 = vpop.f32.mrb[16].mxu0 }
 0x15e   :  { %v773_v15 = vadd.f32 %v2308_v14, %v2845_v16  ;;  %v764_v17 = vpop.f32.mrb[17].mxu0 }
 0x15f   :  { %v765_v18 = vadd.f32 %v2845_v16, %v764_v17  ;;  %v2309_v19 = vpop.f32.mrb[18].mxu0 }
 0x160   :  { %v776_v20 = vadd.f32 %v2309_v19, %v2845_v16  ;;  %v767_v21 = vpop.f32.mrb[19].mxu0  ;;  %v1229_v23 = vmax.f32 %v773_v15, 0.0 }
 0x161   :  { %v768_v22 = vadd.f32 %v2845_v16, %v767_v21  ;;  %v1227_v25 = vmax.f32 %v765_v18, 0.0 }
 0x162   :  { %v1230_v24 = vmax.f32 %v776_v20, 0.0 }
 0x163   :  { %v1228_v26 = vmax.f32 %v768_v22, 0.0 }
 0x164   :  { %v1402_v27 = vpack.c.bf16 %v1230_v24, %v1229_v23 }
 0x165   :  { %v1401_v28 = vpack.c.bf16 %v1228_v26, %v1227_v25  ;;  %v2312_v31 = vpop.f32.mrb[20].mxu0  ;;  %v1345_v26 = vadd.s32 384, %v2830_v5 }
 0x166   :  { %v789_v32 = vadd.f32 %v2312_v31, %v2845_v16  ;;  %v780_v33 = vpop.f32.mrb[21].mxu0 }
 0x167   :  { %v781_v34 = vadd.f32 %v2845_v16, %v780_v33  ;;  %v2313_v35 = vpop.f32.mrb[22].mxu0  ;;  %2166 = vmatprep.subr.bf16.mxu1 %v1401_v28  ;;  %vm1354_vm6 = vcmp.ge.s32.totalorder %v1345_v26, %v2835_v8  ;;  %vm1364_vm7 = vcmp.lt.s32.totalorder %v1345_v26, %v2837_v9 }
 0x168   :  { %v792_v36 = vadd.f32 %v2313_v35, %v2845_v16  ;;  %v783_v37 = vpop.f32.mrb[23].mxu0  ;;  %2167 = vmatpush3.bf16.msra.mxu1 %v2853_v30  ;;  %v1233_v39 = vmax.f32 %v789_v32, 0.0  ;;  %vm2941_vm9 = vmand %vm1354_vm6, %vm1364_vm7 }
 0x169   :  { %v784_v38 = vadd.f32 %v2845_v16, %v783_v37  ;;  %2168 = vmatprep.subr.bf16.mxu1 %v1402_v27  ;;  %v1231_v41 = vmax.f32 %v781_v34, 0.0  ;;  %vm2064_vm11 = vmpackc.low %vm2941_vm9, %vm2941_vm9 }
 0x16a   :  { %v1234_v40 = vmax.f32 %v792_v36, 0.0 }
 0x16b   :  { %v1232_v42 = vmax.f32 %v784_v38, 0.0 }
 0x16c   :  { %v1404_v45 = vpack.c.bf16 %v1234_v40, %v1233_v39  ;;  %2169 = vmatpush3.bf16.msra.mxu1 %v2851_v29  ;;  %v2400_v29 = vpop.f32.mrb[0].mxu1 }
 0x16d   :  { %v1403_v46 = vpack.c.bf16 %v1232_v42, %v1231_v41  ;;  %v2316_v47 = vpop.f32.mrb[24].mxu0  ;;  %v1132_v60 = vpop.f32.mrb[1].mxu1  ;;  %v1141_v1 = vadd.f32 %v2400_v29, %v2845_v16 }
 0x16e   :  { %v805_v48 = vadd.f32 %v2316_v47, %v2845_v16  ;;  %v796_v49 = vpop.f32.mrb[25].mxu0  ;;  %v2401_v62 = vpop.f32.mrb[2].mxu1  ;;  %v1133_v2 = vadd.f32 %v2845_v16, %v1132_v60 }
 0x16f   :  { %v797_v50 = vadd.f32 %v2845_v16, %v796_v49  ;;  %v2317_v51 = vpop.f32.mrb[26].mxu0  ;;  %2170 = vmatprep.subr.bf16.mxu1 %v1403_v46  ;;  %v1135_v4 = vpop.f32.mrb[3].mxu1 }
 0x170   :  { %v808_v30 = vadd.f32 %v2317_v51, %v2845_v16  ;;  %v799_v52 = vpop.f32.mrb[27].mxu0  ;;  %2171 = vmatpush3.bf16.msra.mxu1 %v2861_v44  ;;  %v1237_v54 = vmax.f32 %v805_v48, 0.0  ;;  %v1144_v44 = vadd.f32 %v2401_v62, %v2845_v16  ;;  %v1136_v10 = vadd.f32 %v2845_v16, %v1135_v4  ;;  %v2404_v28 = vpop.f32.mrb[4].mxu1 }
 0x171   :  { %v800_v53 = vadd.f32 %v2845_v16, %v799_v52  ;;  %2172 = vmatprep.subr.bf16.mxu1 %v1404_v45  ;;  %v1235_v56 = vmax.f32 %v797_v50, 0.0  ;;  %v1319_v17 = vmax.f32 %v1133_v2, 0.0  ;;  %v1148_v33 = vpop.f32.mrb[5].mxu1  ;;  %v1157_v37 = vadd.f32 %v2404_v28, %v2845_v16 }
 0x172   :  { %v1238_v55 = vmax.f32 %v808_v30, 0.0  ;;  %v1322_v18 = vmax.f32 %v1144_v44, 0.0  ;;  %v1320_v21 = vmax.f32 %v1136_v10, 0.0  ;;  %v1149_v38 = vadd.f32 %v2845_v16, %v1148_v33 }
 0x173   :  { %v1236_v59 = vmax.f32 %v800_v53, 0.0  ;;  %v1325_v47 = vmax.f32 %v1157_v37, 0.0 }
 0x174   :  { %v1406_v61 = vpack.c.bf16 %v1238_v55, %v1237_v54  ;;  %2173 = vmatpush3.bf16.msra.mxu1 %v2859_v43  ;;  %v1321_v43 = vmax.f32 %v1141_v1, 0.0  ;;  %v2907_v27 = vpack.c.bf16 %v1320_v21, %v1319_v17  ;;  %v1323_v48 = vmax.f32 %v1149_v38, 0.0 }
 0x175   :  { %v1405_v63 = vpack.c.bf16 %v1236_v59, %v1235_v56  ;;  %v2320_v0 = vpop.f32.mrb[28].mxu0 }
 0x176   :  { %v821_v6 = vadd.f32 %v2320_v0, %v2845_v16  ;;  %v812_v7 = vpop.f32.mrb[29].mxu0  ;;  %v2904_v23 = vpack.c.bf16 %v1322_v18, %v1321_v43 }
 0x177   :  { %v813_v14 = vadd.f32 %v2845_v16, %v812_v7  ;;  %v2321_v15 = vpop.f32.mrb[30].mxu0  ;;  %2174 = vmatprep.subr.bf16.mxu1 %v1405_v63 }
 0x178   :  { %v824_v19 = vadd.f32 %v2321_v15, %v2845_v16  ;;  %v815_v20 = vpop.f32.mrb[31].mxu0  ;;  %2175 = vmatpush3.bf16.msra.mxu1 %v2869_v58  ;;  %v1241_v24 = vmax.f32 %v821_v6, 0.0  ;;  %v2405_v58 = vpop.f32.mrb[6].mxu1 }
 0x179   :  { %v816_v22 = vadd.f32 %v2845_v16, %v815_v20  ;;  %2176 = vmatprep.subr.bf16.mxu1 %v1406_v61  ;;  %v1239_v31 = vmax.f32 %v813_v14, 0.0  ;;  %v1160_v39 = vadd.f32 %v2405_v58, %v2845_v16  ;;  %v1151_v40 = vpop.f32.mrb[7].mxu1 }
 0x17a   :  { %v1242_v25 = vmax.f32 %v824_v19, 0.0  ;;  %v2408_v59 = vpop.f32.mrb[8].mxu1 }
 0x17b   :  { %v1240_v32 = vmax.f32 %v816_v22, 0.0  ;;  %v1326_v49 = vmax.f32 %v1160_v39, 0.0  ;;  %v1164_v62 = vpop.f32.mrb[9].mxu1  ;;  %v1173_v44 = vadd.f32 %v2408_v59, %v2845_v16 }
 0x17c   :  { %v1408_v34 = vpack.c.bf16 %v1242_v25, %v1241_v24  ;;  %2177 = vmatpush3.bf16.msra.mxu1 %v2867_v57  ;;  %v1152_v57 = vadd.f32 %v2845_v16, %v1151_v40  ;;  %v2409_v0 = vpop.f32.mrb[10].mxu1  ;;  %v1165_v4 = vadd.f32 %v2845_v16, %v1164_v62 }
 0x17d   :  { %v1407_v35 = vpack.c.bf16 %v1240_v32, %v1239_v31  ;;  %v2324_v36 = vpop.f32.mrb[32].mxu0  ;;  %v2935_v54 = vpack.c.bf16 %v1326_v49, %v1325_v47  ;;  %v1176_v6 = vadd.f32 %v2409_v0, %v2845_v16  ;;  %v1167_v7 = vpop.f32.mrb[11].mxu1  ;;  %v1329_v17 = vmax.f32 %v1173_v44, 0.0 }
 0x17e   :  { %v837_v41 = vadd.f32 %v2324_v36, %v2845_v16  ;;  %v828_v42 = vpop.f32.mrb[33].mxu0  ;;  %v1324_v30 = vmax.f32 %v1152_v57, 0.0  ;;  %v1168_v14 = vadd.f32 %v2845_v16, %v1167_v7  ;;  %v1327_v18 = vmax.f32 %v1165_v4, 0.0  ;;  %v2412_v32 = vpop.f32.mrb[12].mxu1 }
 0x17f   :  { %v829_v45 = vadd.f32 %v2845_v16, %v828_v42  ;;  %v2325_v46 = vpop.f32.mrb[34].mxu0  ;;  %2178 = vmatprep.subr.bf16.mxu1 %v1407_v35  ;;  %v1330_v19 = vmax.f32 %v1176_v6, 0.0  ;;  %v1180_v58 = vpop.f32.mrb[13].mxu1  ;;  %v1189_v39 = vadd.f32 %v2412_v32, %v2845_v16 }
 0x180   :  { %v840_v50 = vadd.f32 %v2325_v46, %v2845_v16  ;;  %v831_v51 = vpop.f32.mrb[35].mxu0  ;;  %2179 = vmatpush3.bf16.msra.mxu1 %v2877_v13  ;;  %v1245_v55 = vmax.f32 %v837_v41, 0.0  ;;  %v2945_v56 = vpack.c.bf16 %v1324_v30, %v1323_v48  ;;  %v1328_v22 = vmax.f32 %v1168_v14, 0.0  ;;  %v2413_v36 = vpop.f32.mrb[14].mxu1 }
 0x181   :  { %v832_v52 = vadd.f32 %v2845_v16, %v831_v51  ;;  %2180 = vmatprep.subr.bf16.mxu1 %v1408_v34  ;;  %v1243_v60 = vmax.f32 %v829_v45, 0.0  ;;  %v2973_v25 = vpack.c.bf16 %v1330_v19, %v1329_v17  ;;  %v1181_v40 = vadd.f32 %v2845_v16, %v1180_v58  ;;  %v1183_v42 = vpop.f32.mrb[15].mxu1 }
 0x182   :  { %v1246_v29 = vmax.f32 %v840_v50, 0.0  ;;  %v2975_v31 = vpack.c.bf16 %v1328_v22, %v1327_v18  ;;  %v1192_v41 = vadd.f32 %v2413_v36, %v2845_v16  ;;  %v1184_v46 = vadd.f32 %v2845_v16, %v1183_v42 }
 0x183   :  { %v1244_v61 = vmax.f32 %v832_v52, 0.0  ;;  %v1333_v49 = vmax.f32 %v1189_v39, 0.0  ;;  %v1331_v50 = vmax.f32 %v1181_v40, 0.0 }
 0x184   :  { %v2947_v63 = vpack.c.bf16 %v1246_v29, %v1245_v55  ;;  %2181 = vmatpush3.bf16.msra.mxu1 %v2875_v11  ;;  %v1334_v51 = vmax.f32 %v1192_v41, 0.0  ;;  %v1332_v53 = vmax.f32 %v1184_v46, 0.0 }
 0x185   :  { %v2953_v1 = vpack.c.bf16 %v1244_v61, %v1243_v60  ;;  %v2328_v2 = vpop.f32.mrb[36].mxu0  ;;  %v2416_v61 = vpop.f32.mrb[16].mxu1 }
 0x186   :  { %v853_v11 = vadd.f32 %v2328_v2, %v2845_v16  ;;  %v844_v10 = vpop.f32.mrb[37].mxu0  ;;  %v2989_v29 = vpack.c.bf16 %v1334_v51, %v1333_v49  ;;  %v2991_v60 = vpack.c.bf16 %v1332_v53, %v1331_v50  ;;  %v1196_v2 = vpop.f32.mrb[17].mxu1 }
 0x187   :  { %v845_v15 = vadd.f32 %v2845_v16, %v844_v10  ;;  %v2329_v43 = vpop.f32.mrb[38].mxu0  ;;  %2063 = vmatmul.mubr.msk.bf16.vlgmr.msra.gmra.mrb[20].mxu1 %vm2062_vm10, %v2710_v12  ;;  %v2417_v4 = vpop.f32.mrb[18].mxu1  ;;  %v1197_v10 = vadd.f32 %v2845_v16, %v1196_v2 }
 0x188   :  { %v856_v20 = vadd.f32 %v2329_v43, %v2845_v16  ;;  %v847_v21 = vpop.f32.mrb[39].mxu0  ;;  %2065 = vmatprep.mubr.msk.bf16.mxu1 %vm2064_vm11, %v2710_v12  ;;  %v1249_v26 = vmax.f32 %v853_v11, 0.0  ;;  %v1205_v11 = vadd.f32 %v2416_v61, %v2845_v16  ;;  %v1208_v14 = vadd.f32 %v2417_v4, %v2845_v16 }
 0x189   :  { %v848_v24 = vadd.f32 %v2845_v16, %v847_v21  ;;  %v1247_v33 = vmax.f32 %v845_v15, 0.0  ;;  %v1199_v15 = vpop.f32.mrb[19].mxu1  ;;  %v1335_v22 = vmax.f32 %v1197_v10, 0.0 }
 0x18a   :  { %v1250_v28 = vmax.f32 %v856_v20, 0.0  ;;  %v1200_v18 = vadd.f32 %v2845_v16, %v1199_v15  ;;  %v1337_v21 = vmax.f32 %v1205_v11, 0.0 }
 0x18b   :  { %v1248_v34 = vmax.f32 %v848_v24, 0.0  ;;  %v1338_v24 = vmax.f32 %v1208_v14, 0.0 }
 0x18c   :  { %v2977_v35 = vpack.c.bf16 %v1250_v28, %v1249_v26  ;;  %v1336_v32 = vmax.f32 %v1200_v18, 0.0 }
 0x18d   :  { %v2979_v37 = vpack.c.bf16 %v1248_v34, %v1247_v33  ;;  %v2332_v38 = vpop.f32.mrb[40].mxu0  ;;  %v3005_v34 = vpack.c.bf16 %v1338_v24, %v1337_v21 }
 0x18e   :  { %v869_v57 = vadd.f32 %v2332_v38, %v2845_v16  ;;  %v860_v45 = vpop.f32.mrb[41].mxu0  ;;  %v3007_v38 = vpack.c.bf16 %v1336_v32, %v1335_v22 }
 0x18f   :  { %v861_v47 = vadd.f32 %v2845_v16, %v860_v45  ;;  %v2333_v48 = vpop.f32.mrb[42].mxu0 }
 0x190   :  { %v872_v30 = vadd.f32 %v2333_v48, %v2845_v16  ;;  %v863_v52 = vpop.f32.mrb[43].mxu0  ;;  %v1253_v13 = vmax.f32 %v869_v57, 0.0 }
 0x191   :  { %v864_v55 = vadd.f32 %v2845_v16, %v863_v52  ;;  %v1251_v62 = vmax.f32 %v861_v47, 0.0 }
 0x192   :  { %v1254_v59 = vmax.f32 %v872_v30, 0.0 }
 0x193   :  { %v1252_v0 = vmax.f32 %v864_v55, 0.0 }
 0x194   :  { %v2993_v44 = vpack.c.bf16 %v1254_v59, %v1253_v13 }
 0x195   :  { %v2995_v6 = vpack.c.bf16 %v1252_v0, %v1251_v62  ;;  %v2336_v7 = vpop.f32.mrb[44].mxu0 }
 0x196   :  { %v885_v43 = vadd.f32 %v2336_v7, %v2845_v16  ;;  %v876_v17 = vpop.f32.mrb[45].mxu0 }
 0x197   :  { %v877_v19 = vadd.f32 %v2845_v16, %v876_v17  ;;  %v2337_v20 = vpop.f32.mrb[46].mxu0 }
 0x198   :  { %v888_v26 = vadd.f32 %v2337_v20, %v2845_v16  ;;  %v879_v28 = vpop.f32.mrb[47].mxu0  ;;  %v1257_v58 = vmax.f32 %v885_v43, 0.0 }
 0x199   :  { %v880_v33 = vadd.f32 %v2845_v16, %v879_v28  ;;  %v1255_v39 = vmax.f32 %v877_v19, 0.0 }
 0x19a   :  { %v1258_v36 = vmax.f32 %v888_v26, 0.0 }
 0x19b   :  { %v1256_v40 = vmax.f32 %v880_v33, 0.0 }
 0x19c   :  { %v3009_v41 = vpack.c.bf16 %v1258_v36, %v1257_v58 }
 0x19d   :  { %v3011_v42 = vpack.c.bf16 %v1256_v40, %v1255_v39  ;;  %v2340_v57 = vpop.f32.mrb[48].mxu0 }
 0x19e   :  { %v901_v45 = vadd.f32 %v2340_v57, %v2845_v16  ;;  %v892_v46 = vpop.f32.mrb[49].mxu0 }
 0x19f   :  { %v893_v47 = vadd.f32 %v2845_v16, %v892_v46  ;;  %v2341_v48 = vpop.f32.mrb[50].mxu0 }
 0x1a0   :  { %v904_v49 = vadd.f32 %v2341_v48, %v2845_v16  ;;  %v895_v50 = vpop.f32.mrb[51].mxu0  ;;  %v1261_v30 = vmax.f32 %v901_v45, 0.0 }
 0x1a1   :  { %v896_v51 = vadd.f32 %v2845_v16, %v895_v50  ;;  %v1259_v53 = vmax.f32 %v893_v47, 0.0 }
 0x1a2   :  { %v1262_v52 = vmax.f32 %v904_v49, 0.0 }
 0x1a3   :  { %v1260_v55 = vmax.f32 %v896_v51, 0.0 }
 0x1a4   :  { %v1418_v13 = vpack.c.bf16 %v1262_v52, %v1261_v30 }
 0x1a5   :  { %v1417_v59 = vpack.c.bf16 %v1260_v55, %v1259_v53  ;;  %v2344_v61 = vpop.f32.mrb[52].mxu0  ;;  %v1347_v55 = vadd.s32 640, %v2830_v5 }
 0x1a6   :  { %v917_v62 = vadd.f32 %v2344_v61, %v2845_v16  ;;  %v908_v0 = vpop.f32.mrb[53].mxu0 }
 0x1a7   :  { %v909_v2 = vadd.f32 %v2845_v16, %v908_v0  ;;  %v2345_v4 = vpop.f32.mrb[54].mxu0  ;;  %2188 = vmatprep.subr.bf16.mxu1 %v1417_v59  ;;  %vm1356_vm14 = vcmp.ge.s32.totalorder %v1347_v55, %v2835_v8  ;;  %vm1366_vm15 = vcmp.lt.s32.totalorder %v1347_v55, %v2837_v9 }
 0x1a8   :  { %v920_v7 = vadd.f32 %v2345_v4, %v2845_v16  ;;  %v911_v11 = vpop.f32.mrb[55].mxu0  ;;  %2189 = vmatpush3.bf16.msra.mxu1 %v2953_v1  ;;  %v1265_v14 = vmax.f32 %v917_v62, 0.0  ;;  %vm3050_vm1 = vmand %vm1356_vm14, %vm1366_vm15 }
 0x1a9   :  { %v912_v10 = vadd.f32 %v2845_v16, %v911_v11  ;;  %2190 = vmatprep.subr.bf16.mxu1 %v1418_v13  ;;  %v1263_v43 = vmax.f32 %v909_v2, 0.0  ;;  %vm2068_vm3 = vmpackc.low %vm3050_vm1, %vm3050_vm1  ;;  %vm1843_vm1 = vcmask 1043456  }
 0x1aa   :  { %v1266_v15 = vmax.f32 %v920_v7, 0.0 }
 0x1ab   :  { %v1264_v17 = vmax.f32 %v912_v10, 0.0 }
 0x1ac   :  { %v1420_v18 = vpack.c.bf16 %v1266_v15, %v1265_v14  ;;  %2191 = vmatpush3.bf16.msra.mxu1 %v2947_v63 }
 0x1ad   :  { %v1419_v19 = vpack.c.bf16 %v1264_v17, %v1263_v43  ;;  %v2348_v20 = vpop.f32.mrb[56].mxu0 }
 0x1ae   :  { %v933_v21 = vadd.f32 %v2348_v20, %v2845_v16  ;;  %v924_v22 = vpop.f32.mrb[57].mxu0 }
 0x1af   :  { %v925_v24 = vadd.f32 %v2845_v16, %v924_v22  ;;  %v2349_v26 = vpop.f32.mrb[58].mxu0  ;;  %2192 = vmatprep.subr.bf16.mxu1 %v1419_v19 }
 0x1b0   :  { %v936_v1 = vadd.f32 %v2349_v26, %v2845_v16  ;;  %v927_v28 = vpop.f32.mrb[59].mxu0  ;;  %2193 = vmatpush3.bf16.msra.mxu1 %v2979_v37  ;;  %v1269_v33 = vmax.f32 %v933_v21, 0.0 }
 0x1b1   :  { %v928_v32 = vadd.f32 %v2845_v16, %v927_v28  ;;  %2194 = vmatprep.subr.bf16.mxu1 %v1420_v18  ;;  %v1267_v63 = vmax.f32 %v925_v24, 0.0 }
 0x1b2   :  { %v1270_v58 = vmax.f32 %v936_v1, 0.0 }
 0x1b3   :  { %v1268_v36 = vmax.f32 %v928_v32, 0.0 }
 0x1b4   :  { %v1422_v39 = vpack.c.bf16 %v1270_v58, %v1269_v33  ;;  %2195 = vmatpush3.bf16.msra.mxu1 %v2977_v35  ;;  %v1344_v35 = vadd.s32 256, %v2830_v5 }
 0x1b5   :  { %v1421_v40 = vpack.c.bf16 %v1268_v36, %v1267_v63  ;;  %v2352_v57 = vpop.f32.mrb[60].mxu0 }
 0x1b6   :  { %v949_v45 = vadd.f32 %v2352_v57, %v2845_v16  ;;  %v940_v46 = vpop.f32.mrb[61].mxu0  ;;  %vm1353_vm12 = vcmp.ge.s32.totalorder %v1344_v35, %v2835_v8  ;;  %vm1363_vm13 = vcmp.lt.s32.totalorder %v1344_v35, %v2837_v9 }
 0x1b7   :  { %v941_v47 = vadd.f32 %v2845_v16, %v940_v46  ;;  %v2353_v48 = vpop.f32.mrb[62].mxu0  ;;  %2196 = vmatprep.subr.bf16.mxu1 %v1421_v40  ;;  %vm3046_vm0 = vmand %vm1353_vm12, %vm1363_vm13 }
 0x1b8   :  { %v952_v37 = vadd.f32 %v2353_v48, %v2845_v16  ;;  %v943_v49 = vpop.f32.mrb[63].mxu0  ;;  %2197 = vmatpush3.bf16.msra.mxu1 %v2995_v6  ;;  %v1273_v51 = vmax.f32 %v949_v45, 0.0  ;;  %vm2066_vm2 = vmpackc.low %vm3046_vm0, %vm3046_vm0  ;;  %vm2712_vm0 = vmmov 0  }
 0x1b9   :  { %v944_v50 = vadd.f32 %v2845_v16, %v943_v49  ;;  %2198 = vmatprep.subr.bf16.mxu1 %v1422_v39  ;;  %v1271_v52 = vmax.f32 %v941_v47, 0.0 }
 0x1ba   :  { %v1274_v30 = vmax.f32 %v952_v37, 0.0 }
 0x1bb   :  { %v1272_v53 = vmax.f32 %v944_v50, 0.0 }
 0x1bc   :  { %v1424_v13 = vpack.c.bf16 %v1274_v30, %v1273_v51  ;;  %2199 = vmatpush3.bf16.msra.mxu1 %v2993_v44 }
 0x1bd   :  { %v1423_v59 = vpack.c.bf16 %v1272_v53, %v1271_v52  ;;  %v2356_v61 = vpop.f32.mrb[64].mxu0 }
 0x1be   :  { %v965_v62 = vadd.f32 %v2356_v61, %v2845_v16  ;;  %v956_v0 = vpop.f32.mrb[65].mxu0 }
 0x1bf   :  { %v957_v6 = vadd.f32 %v2845_v16, %v956_v0  ;;  %v2357_v2 = vpop.f32.mrb[66].mxu0  ;;  %2200 = vmatprep.subr.bf16.mxu1 %v1423_v59 }
 0x1c0   :  { %v968_v4 = vadd.f32 %v2357_v2, %v2845_v16  ;;  %v959_v44 = vpop.f32.mrb[67].mxu0  ;;  %2201 = vmatpush3.bf16.msra.mxu1 %v3011_v42  ;;  %v1277_v10 = vmax.f32 %v965_v62, 0.0 }
 0x1c1   :  { %v960_v7 = vadd.f32 %v2845_v16, %v959_v44  ;;  %2202 = vmatprep.subr.bf16.mxu1 %v1424_v13  ;;  %v1275_v43 = vmax.f32 %v957_v6, 0.0 }
 0x1c2   :  { %v1278_v14 = vmax.f32 %v968_v4, 0.0 }
 0x1c3   :  { %v1276_v17 = vmax.f32 %v960_v7, 0.0 }
 0x1c4   :  { %v3054_v18 = vpack.c.bf16 %v1278_v14, %v1277_v10  ;;  %2203 = vmatpush3.bf16.msra.mxu1 %v3009_v41 }
 0x1c5   :  { %v3060_v42 = vpack.c.bf16 %v1276_v17, %v1275_v43  ;;  %v2360_v19 = vpop.f32.mrb[68].mxu0 }
 0x1c6   :  { %v981_v20 = vadd.f32 %v2360_v19, %v2845_v16  ;;  %v972_v21 = vpop.f32.mrb[69].mxu0 }
 0x1c7   :  { %v973_v22 = vadd.f32 %v2845_v16, %v972_v21  ;;  %v2361_v24 = vpop.f32.mrb[70].mxu0  ;;  %2067 = vmatmul.mubr.msk.bf16.vlgmr.msra.gmra.mrb[24].mxu1 %vm2066_vm2, %v2710_v12  ;;  %vm1921_vm2 = vcmp.eq.s32.totalorder %v2828_v3, %v2830_v5 }
 0x1c8   :  { %v984_v41 = vadd.f32 %v2361_v24, %v2845_v16  ;;  %v975_v26 = vpop.f32.mrb[71].mxu0  ;;  %2069 = vmatprep.mubr.msk.bf16.mxu1 %vm2068_vm3, %v2710_v12  ;;  %v1281_v28 = vmax.f32 %v981_v20, 0.0  ;;  %vm1938_vm3 = vcmask 27648  }
 0x1c9   :  { %v976_v1 = vadd.f32 %v2845_v16, %v975_v26  ;;  %v1279_v33 = vmax.f32 %v973_v22, 0.0 }
 0x1ca   :  { %v1282_v32 = vmax.f32 %v984_v41, 0.0 }
 0x1cb   :  { %v1280_v58 = vmax.f32 %v976_v1, 0.0 }
 0x1cc   :  { %v3071_v63 = vpack.c.bf16 %v1282_v32, %v1281_v28 }
 0x1cd   :  { %v3073_v36 = vpack.c.bf16 %v1280_v58, %v1279_v33  ;;  %v2364_v39 = vpop.f32.mrb[72].mxu0 }
 0x1ce   :  { %v997_v40 = vadd.f32 %v2364_v39, %v2845_v16  ;;  %v988_v57 = vpop.f32.mrb[73].mxu0 }
 0x1cf   :  { %v989_v45 = vadd.f32 %v2845_v16, %v988_v57  ;;  %v2365_v46 = vpop.f32.mrb[74].mxu0 }
 0x1d0   :  { %v1000_v47 = vadd.f32 %v2365_v46, %v2845_v16  ;;  %v991_v48 = vpop.f32.mrb[75].mxu0  ;;  %v1285_v49 = vmax.f32 %v997_v40, 0.0 }
 0x1d1   :  { %v992_v37 = vadd.f32 %v2845_v16, %v991_v48  ;;  %v1283_v51 = vmax.f32 %v989_v45, 0.0 }
 0x1d2   :  { %v1286_v50 = vmax.f32 %v1000_v47, 0.0 }
 0x1d3   :  { %v1284_v30 = vmax.f32 %v992_v37, 0.0 }
 0x1d4   :  { %v3079_v35 = vpack.c.bf16 %v1286_v50, %v1285_v49 }
 0x1d5   :  { %v3081_v52 = vpack.c.bf16 %v1284_v30, %v1283_v51  ;;  %v2368_v53 = vpop.f32.mrb[76].mxu0 }
 0x1d6   :  { %v1013_v55 = vadd.f32 %v2368_v53, %v2845_v16  ;;  %v1004_v13 = vpop.f32.mrb[77].mxu0 }
 0x1d7   :  { %v1005_v59 = vadd.f32 %v2845_v16, %v1004_v13  ;;  %v2369_v61 = vpop.f32.mrb[78].mxu0 }
 0x1d8   :  { %v1016_v62 = vadd.f32 %v2369_v61, %v2845_v16  ;;  %v1007_v0 = vpop.f32.mrb[79].mxu0  ;;  %v1289_v2 = vmax.f32 %v1013_v55, 0.0 }
 0x1d9   :  { %v1008_v6 = vadd.f32 %v2845_v16, %v1007_v0  ;;  %v1287_v44 = vmax.f32 %v1005_v59, 0.0 }
 0x1da   :  { %v1290_v4 = vmax.f32 %v1016_v62, 0.0 }
 0x1db   :  { %v1288_v7 = vmax.f32 %v1008_v6, 0.0 }
 0x1dc   :  { %v3087_v11 = vpack.c.bf16 %v1290_v4, %v1289_v2 }
 0x1dd   :  { %v3089_v10 = vpack.c.bf16 %v1288_v7, %v1287_v44  ;;  %v2372_v14 = vpop.f32.mrb[80].mxu0 }
 0x1de   :  { %v1029_v15 = vadd.f32 %v2372_v14, %v2845_v16  ;;  %v1020_v43 = vpop.f32.mrb[81].mxu0 }
 0x1df   :  { %v1021_v17 = vadd.f32 %v2845_v16, %v1020_v43  ;;  %v2373_v19 = vpop.f32.mrb[82].mxu0 }
 0x1e0   :  { %v1032_v20 = vadd.f32 %v2373_v19, %v2845_v16  ;;  %v1023_v21 = vpop.f32.mrb[83].mxu0  ;;  %v1293_v24 = vmax.f32 %v1029_v15, 0.0 }
 0x1e1   :  { %v1024_v22 = vadd.f32 %v2845_v16, %v1023_v21  ;;  %v1291_v26 = vmax.f32 %v1021_v17, 0.0 }
 0x1e2   :  { %v1294_v41 = vmax.f32 %v1032_v20, 0.0 }
 0x1e3   :  { %v1292_v1 = vmax.f32 %v1024_v22, 0.0 }
 0x1e4   :  { %v1434_v28 = vpack.c.bf16 %v1294_v41, %v1293_v24 }
 0x1e5   :  { %v1433_v32 = vpack.c.bf16 %v1292_v1, %v1291_v26  ;;  %v2376_v33 = vpop.f32.mrb[84].mxu0  ;;  %v1349_v1 = vadd.s32 896, %v2830_v5 }
 0x1e6   :  { %v1045_v58 = vadd.f32 %v2376_v33, %v2845_v16  ;;  %v1036_v39 = vpop.f32.mrb[85].mxu0 }
 0x1e7   :  { %v1037_v40 = vadd.f32 %v2845_v16, %v1036_v39  ;;  %v2377_v57 = vpop.f32.mrb[86].mxu0  ;;  %2210 = vmatprep.subr.bf16.mxu1 %v1433_v32  ;;  %vm1358_vm6 = vcmp.ge.s32.totalorder %v1349_v1, %v2835_v8  ;;  %vm1368_vm7 = vcmp.lt.s32.totalorder %v1349_v1, %v2837_v9  ;;  %v2570_v1 = vld [vmem:[#allocation7 + $0x38] sm:$0xff]  }
 0x1e8   :  { %v1048_v45 = vadd.f32 %v2377_v57, %v2845_v16  ;;  %v1039_v46 = vpop.f32.mrb[87].mxu0  ;;  %2211 = vmatpush3.bf16.msra.mxu1 %v3060_v42  ;;  %v1297_v48 = vmax.f32 %v1045_v58, 0.0  ;;  %vm3128_vm9 = vmand %vm1358_vm6, %vm1368_vm7 }
 0x1e9   :  { %v1040_v47 = vadd.f32 %v2845_v16, %v1039_v46  ;;  %2212 = vmatprep.subr.bf16.mxu1 %v1434_v28  ;;  %v1295_v49 = vmax.f32 %v1037_v40, 0.0  ;;  %vm2072_vm11 = vmpackc.low %vm3128_vm9, %vm3128_vm9 }
 0x1ea   :  { %v1298_v37 = vmax.f32 %v1048_v45, 0.0 }
 0x1eb   :  { %v1296_v50 = vmax.f32 %v1040_v47, 0.0 }
 0x1ec   :  { %v1436_v51 = vpack.c.bf16 %v1298_v37, %v1297_v48  ;;  %2213 = vmatpush3.bf16.msra.mxu1 %v3054_v18 }
 0x1ed   :  { %v1435_v30 = vpack.c.bf16 %v1296_v50, %v1295_v49  ;;  %v2380_v53 = vpop.f32.mrb[88].mxu0 }
 0x1ee   :  { %v1061_v55 = vadd.f32 %v2380_v53, %v2845_v16  ;;  %v1052_v13 = vpop.f32.mrb[89].mxu0 }
 0x1ef   :  { %v1053_v59 = vadd.f32 %v2845_v16, %v1052_v13  ;;  %v2381_v61 = vpop.f32.mrb[90].mxu0  ;;  %2214 = vmatprep.subr.bf16.mxu1 %v1435_v30 }
 0x1f0   :  { %v1064_v42 = vadd.f32 %v2381_v61, %v2845_v16  ;;  %v1055_v62 = vpop.f32.mrb[91].mxu0  ;;  %2215 = vmatpush3.bf16.msra.mxu1 %v3073_v36  ;;  %v1301_v6 = vmax.f32 %v1061_v55, 0.0 }
 0x1f1   :  { %v1056_v0 = vadd.f32 %v2845_v16, %v1055_v62  ;;  %2216 = vmatprep.subr.bf16.mxu1 %v1436_v51  ;;  %v1299_v18 = vmax.f32 %v1053_v59, 0.0 }
 0x1f2   :  { %v1302_v2 = vmax.f32 %v1064_v42, 0.0 }
 0x1f3   :  { %v1300_v4 = vmax.f32 %v1056_v0, 0.0 }
 0x1f4   :  { %v1438_v44 = vpack.c.bf16 %v1302_v2, %v1301_v6  ;;  %2217 = vmatpush3.bf16.msra.mxu1 %v3071_v63  ;;  %v1346_v63 = vadd.s32 512, %v2830_v5 }
 0x1f5   :  { %v1437_v7 = vpack.c.bf16 %v1300_v4, %v1299_v18  ;;  %v2384_v14 = vpop.f32.mrb[92].mxu0 }
 0x1f6   :  { %v1077_v15 = vadd.f32 %v2384_v14, %v2845_v16  ;;  %v1068_v43 = vpop.f32.mrb[93].mxu0  ;;  %vm1355_vm4 = vcmp.ge.s32.totalorder %v1346_v63, %v2835_v8  ;;  %vm1365_vm5 = vcmp.lt.s32.totalorder %v1346_v63, %v2837_v9 }
 0x1f7   :  { %v1069_v17 = vadd.f32 %v2845_v16, %v1068_v43  ;;  %v2385_v19 = vpop.f32.mrb[94].mxu0  ;;  %2218 = vmatprep.subr.bf16.mxu1 %v1437_v7  ;;  %vm3124_vm8 = vmand %vm1355_vm4, %vm1365_vm5  ;;  %vm1955_vm5 = vcmask 3072  }
 0x1f8   :  { %v1080_v36 = vadd.f32 %v2385_v19, %v2845_v16  ;;  %v1071_v20 = vpop.f32.mrb[95].mxu0  ;;  %2219 = vmatpush3.bf16.msra.mxu1 %v3081_v52  ;;  %v1305_v22 = vmax.f32 %v1077_v15, 0.0  ;;  %vm2070_vm10 = vmpackc.low %vm3124_vm8, %vm3124_vm8 }
 0x1f9   :  { %v1072_v21 = vadd.f32 %v2845_v16, %v1071_v20  ;;  %2220 = vmatprep.subr.bf16.mxu1 %v1438_v44  ;;  %v1303_v41 = vmax.f32 %v1069_v17, 0.0 }
 0x1fa   :  { %v1306_v24 = vmax.f32 %v1080_v36, 0.0 }
 0x1fb   :  { %v1304_v26 = vmax.f32 %v1072_v21, 0.0 }
 0x1fc   :  { %v1440_v28 = vpack.c.bf16 %v1306_v24, %v1305_v22  ;;  %2221 = vmatpush3.bf16.msra.mxu1 %v3079_v35 }
 0x1fd   :  { %v1439_v32 = vpack.c.bf16 %v1304_v26, %v1303_v41  ;;  %v2388_v33 = vpop.f32.mrb[96].mxu0  ;;  %v2711_v26 = vmov 0.0  }
 0x1fe   :  { %v1093_v58 = vadd.f32 %v2388_v33, %v2845_v16  ;;  %v1084_v39 = vpop.f32.mrb[97].mxu0 }
 0x1ff   :  { %v1085_v52 = vadd.f32 %v2845_v16, %v1084_v39  ;;  %v2389_v40 = vpop.f32.mrb[98].mxu0  ;;  %2222 = vmatprep.subr.bf16.mxu1 %v1439_v32 }
 0x200   :  { %v1309_v57 = vmax.f32 %v1093_v58, 0.0  ;;  %v1096_v35 = vadd.f32 %v2389_v40, %v2845_v16  ;;  %v1087_v45 = vpop.f32.mrb[99].mxu0  ;;  %2223 = vmatpush3.bf16.msra.mxu1 %v3089_v10 }
 0x201   :  { %v1088_v46 = vadd.f32 %v2845_v16, %v1087_v45  ;;  %2224 = vmatprep.subr.bf16.mxu1 %v1440_v28  ;;  %v1307_v49 = vmax.f32 %v1085_v52, 0.0 }
 0x202   :  { %v1310_v48 = vmax.f32 %v1096_v35, 0.0 }
 0x203   :  { %v1308_v50 = vmax.f32 %v1088_v46, 0.0 }
 0x204   :  { %v1442_v51 = vpack.c.bf16 %v1310_v48, %v1309_v57  ;;  %2225 = vmatpush3.bf16.msra.mxu1 %v3087_v11 }
 0x205   :  { %v1441_v10 = vpack.c.bf16 %v1308_v50, %v1307_v49  ;;  %v2392_v30 = vpop.f32.mrb[100].mxu0  ;;  %2232 = vmatprep.subr.bf16.mxu1 %v2945_v56  ;;  %v2585_v56 = vld [vmem:[%s3208_s2] ss:$0 sm:$0xff] }
 0x206   :  { %v1109_v53 = vadd.f32 %v2392_v30, %v2845_v16  ;;  %v1100_v55 = vpop.f32.mrb[101].mxu0  ;;  %v2571_v30 = vld [vmem:[#allocation8] sm:$0xff]  }
 0x207   :  { %v1101_v13 = vadd.f32 %v2845_v16, %v1100_v55  ;;  %v2393_v59 = vpop.f32.mrb[102].mxu0  ;;  %2071 = vmatmul.mubr.msk.bf16.vlgmr.msra.gmra.mrb[28].mxu1 %vm2070_vm10, %v2710_v12  ;;  %v2572_v55 = vld [vmem:[#allocation8 + $0x8] sm:$0xff]  }
 0x208   :  { %v1313_v11 = vmax.f32 %v1109_v53, 0.0  ;;  %v1112_v61 = vadd.f32 %v2393_v59, %v2845_v16  ;;  %v1103_v42 = vpop.f32.mrb[103].mxu0  ;;  %2233 = vmatpush3.bf16.msra.mxu1 %v1441_v10  ;;  %2073 = vmatprep.mubr.msk.bf16.mxu1 %vm2072_vm11, %v2710_v12  ;;  %v2574_v59 = vld [vmem:[#allocation8 + $0x18] sm:$0xff]  }
 0x209   :  { %v1104_v62 = vadd.f32 %v2585_v56, %v1103_v42  ;;  %2234 = vmatprep.subr.bf16.mxu1 %v2935_v54  ;;  %v1311_v6 = vmax.f32 %v1101_v13, 0.0  ;;  %v2573_v13 = vld [vmem:[#allocation8 + $0x10] sm:$0xff]  }
 0x20a   :  { %v1314_v0 = vmax.f32 %v1112_v61, 0.0  ;;  %v2576_v61 = vld [vmem:[#allocation8 + $0x28] sm:$0xff]   ;;  %v2577_v42 = vld [vmem:[#allocation8 + $0x30] sm:$0xff]  }
 0x20b   :  { %v1312_v2 = vmax.f32 %v1104_v62, 0.0  ;;  %v2076_v62 = vld [vmem:[%s3210_s4] ss:$0 sm:$0xff]  ;;  %s2713_s4 = smov [#allocation10]  }
 0x20c   :  { %v1444_v18 = vpack.c.bf16 %v1314_v0, %v1313_v11  ;;  %2235 = vmatpush3.bf16.msra.mxu1 %v1442_v51  ;;  %v2575_v11 = vld [vmem:[#allocation8 + $0x20] sm:$0xff]  }
 0x20d   :  { %v1443_v4 = vpack.c.bf16 %v1312_v2, %v1311_v6  ;;  %v2396_v44 = vpop.f32.mrb[104].mxu0  ;;  %2236 = vmatprep.subr.bf16.mxu1 %v2975_v31  ;;  %v1348_v31 = vadd.s32 768, %v2830_v5 }
 0x20e   :  { %v1125_v16 = vadd.f32 %v2585_v56, %v2396_v44  ;;  %v1116_v7 = vpop.f32.mrb[105].mxu0 }
 0x20f   :  { %v1117_v14 = vadd.f32 %v2585_v56, %v1116_v7  ;;  %v2397_v15 = vpop.f32.mrb[106].mxu0  ;;  %vm1357_vm12 = vcmp.ge.s32.totalorder %v1348_v31, %v2835_v8  ;;  %vm1367_vm13 = vcmp.lt.s32.totalorder %v1348_v31, %v2837_v9  ;;  %v2564_v8 = vld [vmem:[#allocation7 + $0x8] sm:$0xff]   ;;  %v2565_v9 = vld [vmem:[#allocation7 + $0x10] sm:$0xff]   ;;  %v2085_v7 = vld [vmem:[%s3212_s6] ss:$0 sm:$0xff]  ;;  %s1976_s6 = sshll.u32 %s2713_s4, 4  ;;  %s1977_s6 = int_to_ptr.vmem [resolvable:$true] %s1976_s6 }
 0x210   :  { %v1317_v43 = vmax.f32 %v1125_v16, 0.0  ;;  %v1128_v17 = vadd.f32 %v2585_v56, %v2397_v15  ;;  %v1119_v19 = vpop.f32.mrb[107].mxu0  ;;  %2237 = vmatpush3.bf16.msra.mxu1 %v1443_v4  ;;  %vm1375_vm14 = vmand %vm1357_vm12, %vm1367_vm13  ;;  %s2674_s9 = scalar_lea.vmem %s1977_s6, 128  ;;  %p2679_p5 = scmp.lt.s32.totalorder %s1977_s6, %s1977_s6 }
 0x211   :  { %v1120_v36 = vadd.f32 %v2585_v56, %v1119_v19  ;;  %2238 = vmatprep.subr.bf16.mxu1 %v2973_v25  ;;  %v1315_v20 = vmax.f32 %v1117_v14, 0.0  ;;  %vm2074_vm15 = vmpackc.low %vm1375_vm14, %vm1375_vm14  ;;  %v2578_v56 = vld [vmem:[#allocation8 + $0x38] sm:$0xff]   ;;  %p2675_p4 = scmp.ne.s32.totalorder %s1977_s6, %s2674_s9  ;;  %p2680_p6 = scmp.lt.s32.totalorder %s2674_s9, %s2674_s9 }
 0x212   :  { %v1318_v54 = vmax.f32 %v1128_v17, 0.0 }
 0x213   :  { %v1316_v21 = vmax.f32 %v1120_v36, 0.0  ;;  %p2681_p7 = por %p2680_p6, %p2679_p5 }
 0x214   :  { %v1446_v22 = vpack.c.bf16 %v1318_v54, %v1317_v43  ;;  %2239 = vmatpush3.bf16.msra.mxu1 %v1444_v18 }
 0x215   :  { %v1445_v24 = vpack.c.bf16 %v1316_v21, %v1315_v20  ;;  %2240 = vmatprep.subr.bf16.mxu1 %v2991_v60  ;;  %p2682_p8 = pnand %p2681_p7, %p2675_p4 }
 0x218   :  { %2241 = vmatpush3.bf16.msra.mxu1 %v1445_v24 }
 0x219   :  { %2242 = vmatprep.subr.bf16.mxu1 %v2989_v29 }
 0x21c   :  { %2243 = vmatpush3.bf16.msra.mxu1 %v1446_v22 }
 0x21d   :  { %2244 = vmatprep.subr.bf16.mxu1 %v3007_v38  ;;  %v2563_v38 = vld [vmem:[#allocation7] sm:$0xff]  }
 0x220   :  { %2245 = vmatpush3.bf16.msra.mxu1 %v2907_v27  ;;  %v2568_v27 = vld [vmem:[#allocation7 + $0x28] sm:$0xff]  }
 0x221   :  { %2246 = vmatprep.subr.bf16.mxu1 %v3005_v34  ;;  %v2569_v34 = vld [vmem:[#allocation7 + $0x30] sm:$0xff]  }
 0x224   :  { %2247 = vmatpush3.bf16.msra.mxu1 %v2904_v23  ;;  %v2566_v23 = vld [vmem:[#allocation7 + $0x18] sm:$0xff]  }
 0x225   :  { %2418 = vmatprep.subr.bf16.mxu1 %v2711_v26 }
 0x227   :  { %2075 = vmatmul.mubr.msk.bf16.vlgmr.msra.gmra.mrb[32].mxu1 %vm2074_vm15, %v2710_v12  ;;  %v2567_v12 = vld [vmem:[#allocation7 + $0x20] sm:$0xff]  }
 0x228   :  { %2419 = vmatpush3.bf16.msra.mxu1 %v2563_v38  ;;  %2434 = vmatprep.mubr.msk.bf16.mxu1 %vm2712_vm0, %v2711_v26 }
 0x229   :  { %2420 = vmatprep.subr.bf16.mxu1 %v2711_v26 }
 0x22c   :  { %2421 = vmatpush3.bf16.msra.mxu1 %v2564_v8  ;;  %v1923_v8 = vadd.s32 2, %v2828_v3 }
 0x22d   :  { %2422 = vmatprep.subr.bf16.mxu1 %v2711_v26 }
 0x230   :  { %2423 = vmatpush3.bf16.msra.mxu1 %v2565_v9  ;;  %v1928_v9 = vand.u32 3, %v1923_v8 }
 0x231   :  { %2424 = vmatprep.subr.bf16.mxu1 %v2711_v26 }
 0x232   :  { %vm1936_vm4 = vcmp.eq.s32.totalorder %v2830_v5, %v1928_v9 }
 0x234   :  { %2425 = vmatpush3.bf16.msra.mxu1 %v2566_v23 }
 0x235   :  { %2426 = vmatprep.subr.bf16.mxu1 %v2711_v26 }
 0x238   :  { %2427 = vmatpush3.bf16.msra.mxu1 %v2567_v12 }
 0x239   :  { %2428 = vmatprep.subr.bf16.mxu1 %v2711_v26 }
 0x23c   :  { %2429 = vmatpush3.bf16.msra.mxu1 %v2568_v27 }
 0x23d   :  { %2430 = vmatprep.subr.bf16.mxu1 %v2711_v26 }
 0x240   :  { %2431 = vmatpush3.bf16.msra.mxu1 %v2569_v34 }
 0x241   :  { %2432 = vmatprep.subr.bf16.mxu1 %v2711_v26 }
 0x244   :  { %2433 = vmatpush3.bf16.msra.mxu1 %v2570_v1 }
 0x245   :  { %2438 = vmatprep.subr.bf16.mxu1 %v2711_v26 }
 0x25a   :  { %v2182_v25 = vpop.f32.mrb[20].mxu1 }
 0x25b   :  { %v2183_v29 = vpop.f32.mrb[21].mxu1 }
 0x25c   :  { %v2184_v60 = vadd.f32 %v2183_v29, %v2182_v25  ;;  %v2185_v63 = vpop.f32.mrb[22].mxu1 }
 0x25d   :  { %v2186_v41 = vpop.f32.mrb[23].mxu1 }
 0x29a   :  { %v2204_v28 = vpop.f32.mrb[24].mxu1 }
 0x29b   :  { %v2205_v32 = vpop.f32.mrb[25].mxu1 }
 0x29c   :  { %v2206_v33 = vadd.f32 %v2205_v32, %v2204_v28  ;;  %v2207_v58 = vpop.f32.mrb[26].mxu1 }
 0x29d   :  { %v2208_v39 = vpop.f32.mrb[27].mxu1 }
 0x29e   :  { %v1532_v52 = vadd.f32 %v2206_v33, %v2184_v60 }
 0x2da   :  { %v2226_v40 = vpop.f32.mrb[28].mxu1 }
 0x2db   :  { %v2227_v57 = vpop.f32.mrb[29].mxu1 }
 0x2dc   :  { %v2228_v35 = vadd.f32 %v2227_v57, %v2226_v40  ;;  %v2229_v45 = vpop.f32.mrb[30].mxu1 }
 0x2dd   :  { %v2230_v46 = vpop.f32.mrb[31].mxu1 }
 0x2de   :  { %v1572_v47 = vadd.f32 %v2228_v35, %v1532_v52 }
 0x2fa   :  { %v2248_v48 = vpop.f32.mrb[32].mxu1 }
 0x2fb   :  { %v2249_v37 = vpop.f32.mrb[33].mxu1 }
 0x2fc   :  { %v2250_v49 = vadd.f32 %v2249_v37, %v2248_v48  ;;  %v2251_v50 = vpop.f32.mrb[34].mxu1 }
 0x2fd   :  { %v2252_v51 = vpop.f32.mrb[35].mxu1 }
 0x2fe   :  { %v1612_v10 = vadd.f32 %v2250_v49, %v1572_v47 }
 0x300   :  { %v1617_v53 = vpack.c.bf16 %v1612_v10, %v1612_v10 }
 0x302   :  { %2435 = vmatmul.mubr.bf16.vlgmr.msra.gmra.mrb[36].mxu1 %v1617_v53 }
 0x303   :  { %2439 = vmatpush3.bf16.msra.mxu1 %v2571_v30  ;;  %2454 = vmatprep.mubr.msk.bf16.mxu1 %vm2712_vm0, %v2711_v26 }
 0x304   :  { %2440 = vmatprep.subr.bf16.mxu1 %v2711_v26 }
 0x307   :  { %2441 = vmatpush3.bf16.msra.mxu1 %v2572_v55 }
 0x308   :  { %2442 = vmatprep.subr.bf16.mxu1 %v2711_v26 }
 0x30b   :  { %2443 = vmatpush3.bf16.msra.mxu1 %v2573_v13 }
 0x30c   :  { %2444 = vmatprep.subr.bf16.mxu1 %v2711_v26 }
 0x30f   :  { %2445 = vmatpush3.bf16.msra.mxu1 %v2574_v59 }
 0x310   :  { %2446 = vmatprep.subr.bf16.mxu1 %v2711_v26 }
 0x313   :  { %2447 = vmatpush3.bf16.msra.mxu1 %v2575_v11 }
 0x314   :  { %2448 = vmatprep.subr.bf16.mxu1 %v2711_v26 }
 0x317   :  { %2449 = vmatpush3.bf16.msra.mxu1 %v2576_v61 }
 0x318   :  { %2450 = vmatprep.subr.bf16.mxu1 %v2711_v26 }
 0x31b   :  { %2451 = vmatpush3.bf16.msra.mxu1 %v2577_v42 }
 0x31c   :  { %2452 = vmatprep.subr.bf16.mxu1 %v2711_v26 }
 0x31f   :  { %2453 = vmatpush3.bf16.msra.mxu1 %v2578_v56 }
 0x320   :  { %2458 = vmatprep.subr.mxu1 %v2711_v26 }
 0x3d5   :  { %v1723_v0 = vpop.f32.mrb[36].mxu1 }
 0x3d6   :  { %v1724_v6 = vadd.f32 %v2076_v62, %v1723_v0  ;;  %v2436_v2 = vpop.f32.mrb[37].mxu1 }
 0x3d7   :  { %v1726_v18 = vpop.f32.mrb[38].mxu1 }
 0x3d8   :  { %v1729_v4 = vmax.f32 %v1724_v6, 0.0  ;;  %v2437_v44 = vpop.f32.mrb[39].mxu1 }
 0x3da   :  { %v1730_v16 = vpack.c.bf16 %v1729_v4, %v1729_v4 }
 0x3dc   :  { %2455 = vmatmul.mubr.bf16.vlgmr.msra.gmra.mrb[40].mxu1 %v1730_v16 }
 0x3dd   :  { %2460 = vmatprep.mubr.msk.f32.mxu1 %vm2712_vm0, %v2711_v26 }
 0x4af   :  { %v1836_v14 = vpop.f32.mrb[40].mxu1 }
 0x4b0   :  { %v1837_v15 = vadd.f32 %v2085_v7, %v1836_v14  ;;  %v2456_v43 = vpop.f32.mrb[41].mxu1 }
 0x4b1   :  { %v1839_v17 = vpop.f32.mrb[42].mxu1 }
 0x4b2   :  { %v2457_v19 = vpop.f32.mrb[43].mxu1  ;;  %v1842_v36 = vmul.f32 %v1837_v15, %v1837_v15 }
 0x4b4   :  { %v1844_v54 = vsel %vm1843_vm1, %v1842_v36, 0.0 }
 0x4b5   :  { %1845 = vadd.xlane.f32.xlu0 %v1844_v54 }
 0x542   :  { %v1846_v20 = vpop.xlane.xlu0 %1845 }
 0x543   :  { %v1847_v21 = vadd.f32 1e-12, %v1846_v20 }
 0x545   :  { %2579 = vrsqrt.f32 %v1847_v21 }
 0x54f   :  { %v2580_v22 = vpop.eup %2579 }
 0x550   :  { %v1849_v24 = vmul.f32 %v2580_v22, %v1837_v15 }
 0x552   :  { %2459 = vmatpush3.xpose.msra.mxu1 %v1849_v24 }
 0x555   :  { %2461 = vmatmul.mubr.f32.vlgmr.msra.gmra.mrb[44].mxu1 %v1849_v24 }
 0x628   :  { %v1916_v31 = vpop.f32.mrb[44].mxu1 }
 0x629   :  { %v1920_v25 = vmul.f32 10.0, %v1916_v31  ;;  %v2462_v29 = vpop.f32.mrb[45].mxu1 }
 0x62b   :  { %v1922_v60 = vsel %vm1921_vm2, -1e+09, %v1920_v25 }
 0x62c   :  { %v1942_v63 = vsel %vm1938_vm3, %v1922_v60, -inf  ;;  %v1937_v27 = vsel %vm1936_vm4, %v1922_v60, 0.0 }
 0x62d   :  { %1943 = vmax.xlane.f32.xlu0 %v1942_v63  ;;  %v1939_v34 = vsel %vm1938_vm3, %v1937_v27, 0.0 }
 0x6ba   :  { %v1944_v41 = vpop.xlane.xlu0 %1943 }
 0x6bb   :  { %v1945_v38 = vsub.f32 %v1922_v60, %v1944_v41 }
 0x6bd   :  { %v1946_v26 = vmul.f32 1.442695, %v1945_v38 }
 0x6bf   :  { %2581 = vpow2.f32 %v1946_v26 }
 0x6c9   :  { %v2582_v23 = vpop.eup %2581 }
 0x6ca   :  { %v1948_v12 = vsel %vm1938_vm3, %v2582_v23, 0.0 }
 0x6cb   :  { %1949 = vadd.xlane.f32.xlu1 %v1948_v12 }
 0x6cf   :  { %1940 = vadd.xlane.f32.xlu1 %v1939_v34 }
 0x758   :  { %v1950_v1 = vpop.xlane.xlu1 %1949 }
 0x759   :  { %2583 = vlog2.f32 %v1950_v1 }
 0x75c   :  { %v1941_v58 = vpop.xlane.xlu1 %1940 }
 0x763   :  { %v2584_v28 = vpop.eup %2583 }
 0x764   :  { %v1952_v32 = vmul.f32 0.6931472, %v2584_v28 }
 0x766   :  { %v1953_v33 = vadd.f32 %v1952_v32, %v1944_v41 }
 0x768   :  { %v1954_v39 = vsub.f32 %v1953_v33, %v1941_v58 }
 0x76a   :  { %v1956_v52 = vsel %vm1955_vm5, %v1954_v39, 0.0 }
 0x76b   :  { %1957 = vadd.xlane.f32.xlu0 %v1956_v52 }
 0x7f8   :  { %v1958_v3 = vpop.xlane.xlu0 %1957 }
 0x7f9   :  { %v1959_v40 = vrot.slane %v1958_v3, 4 }
 0x7fb   :  { %v1960_v57 = vadd.f32 %v1959_v40, %v1958_v3 }
 0x7fd   :  { %v1961_v5 = vrot.slane %v1960_v57, 2 }
 0x7ff   :  { %v1962_v35 = vadd.f32 %v1961_v5, %v1960_v57 }
 0x801   :  { %v1963_v45 = vrot.slane %v1962_v35, 1 }
 0x803   :  { %v1964_v46 = vadd.f32 %v1963_v45, %v1962_v35 }
 0x805   :  { %2479 = vpush %v1964_v46 }
 0x836   :  { %s2480_s8 = spop %2479 }
 0x837   :  { %v1966_v47 = vstv %s2480_s8 }
 0x838   :  { %v1968_v48 = vmul.f32 0.25, %v1966_v47 }
 0x83a   :  { %1969 = vst [vmem:[#allocation10] sm:$0xff] %v1968_v48 }
 0x83b   :  { %2685 = shalt.err (!%p2682_p8)
}
 0x83c   :  { %s2686_s12 = scalar_lea.hbm %s3213_s7, 128 }
 0x83d   :  { %p2687_p9 = scmp.ne.s32.totalorder %s3213_s7, %s2686_s12  ;;  %p2690_p10 = scmp.lt.u32.totalorder %s2686_s12, %s3213_s7 }
 0x83f   :  { %p2692_p11 = pnand %p2690_p10, %p2687_p9 }
 0x841   :  { %2695 = shalt.err (!%p2692_p11)
}
 0x842   :  { %1979 = dma.vmem_to_hbm [thread:$0]  %s1977_s6, 128, %s3213_s7, [#allocation4]  }
 0x843   :  { %2702 = dma.done.wait [#allocation4], 128  }
 0x844   :  { %2703 = vsyncadd [#allocation4], 4294967168 }
 0x845   :  { %1983 = vsyncpa [#allocation3], 1 }
 0x846   :  { %1984 = vsyncpa [#allocation6], 1 }
 0x847   :  { %1985 = vsyncpa [#allocation9], 1 }
 0x848   :  { %1986 = vsyncpa [#allocation4], 1 }

</bundles_post_ra>
